<compile_context>
chip_gen: v6e
topology: v6e:2x2x1
jax: 0.10.0
libtpu: 0.0.40
codegen_flags: <defaults>
</compile_context>

<pallas_src>
import math
import functools

import jax
import jax.numpy as jnp
from jax.experimental import pallas as pl
from jax.experimental.pallas import tpu as pltpu

NEG = -1e30      # additive key-padding mask value (kept in f32)
LN_EPS = 1e-5    # PyTorch LayerNorm default eps


def _layernorm(x, w, b):
    # x: [N, D]; w, b: [1, D] (all f32)
    mu = jnp.mean(x, axis=-1, keepdims=True)
    var = jnp.mean((x - mu) ** 2, axis=-1, keepdims=True)
    return (x - mu) * jax.lax.rsqrt(var + LN_EPS) * w + b


# ----------------------------------------------------------------------------
# Fused kernel: L encoder layers (F-tiled FFN) -> final LayerNorm + masked mean
# ----------------------------------------------------------------------------
def make_fused_kernel(nhead, num_layers, TB, S, D, compute_dtype):
    Dh = D // nhead
    N = TB * S
    cdt = compute_dtype

    def kernel(x0_ref, bias_ref, valid_ref,
               wqkv_ref, bqkv_ref, wo_ref, bo_ref,
               ln1w_ref, ln1b_ref, w1_ref, b1_ref, w2_ref, b2_ref,
               ln2w_ref, ln2b_ref, normw_ref, normb_ref,
               out_ref, act_ref, ctx_ref, x1_ref, ffacc_ref):
        layer = pl.program_id(1)
        fstep = pl.program_id(2)
        nf = pl.num_programs(2)

        # ---- F-step 0: self-attention + first residual/LayerNorm ------------
        @pl.when(fstep == 0)
        def _attention():
            @pl.when(layer == 0)
            def _():
                # layer-0 activations (embedding + PE) come from the wrapper
                act_ref[...] = x0_ref[...].reshape(N, D)

            x = act_ref[...]                       # [N, D] f32 activation slab
            bias = bias_ref[...]                   # [TB, S] additive key-padding bias

            qkv = jnp.dot(x.astype(cdt), wqkv_ref[...],
                          preferred_element_type=jnp.float32) + bqkv_ref[...]

            # Per-head attention; 1/sqrt(Dh) is pre-folded into the Q weights.
            # Head outputs go into the preallocated ctx scratch (lane-slice
            # stores), merged by ONE [N, D] x [D, D] output projection.
            # TODO(synk): fold heads into a single batched einsum for Dh>=128.
            for h in range(nhead):
                qh = qkv[:, h * Dh:(h + 1) * Dh].reshape(TB, S, Dh).astype(cdt)
                kh = qkv[:, D + h * Dh:D + (h + 1) * Dh].reshape(TB, S, Dh).astype(cdt)
                vh = qkv[:, 2 * D + h * Dh:2 * D + (h + 1) * Dh].reshape(TB, S, Dh).astype(cdt)
                s_h = jnp.einsum('bqd,bkd->bqk', qh, kh,
                                 preferred_element_type=jnp.float32)  # [TB, S, S] f32
                s_h = s_h + bias[:, None, :]
                m = jnp.max(s_h, axis=-1, keepdims=True)
                p = jnp.exp(s_h - m)
                attn = p * pl.reciprocal(jnp.sum(p, axis=-1, keepdims=True),
                                         approx=True)
                c_h = jnp.einsum('bqk,bkd->bqd', attn.astype(cdt), vh,
                                 preferred_element_type=jnp.float32)  # [TB, S, Dh]
                ctx_ref[:, h * Dh:(h + 1) * Dh] = c_h.reshape(N, Dh)

            attn_out = jnp.dot(ctx_ref[...].astype(cdt), wo_ref[...],
                               preferred_element_type=jnp.float32) + bo_ref[...]
            x1_ref[...] = _layernorm(x + attn_out, ln1w_ref[...], ln1b_ref[...])
            ffacc_ref[...] = jnp.zeros_like(ffacc_ref)

        # ---- every F-step: one (D x TF)/(TF x D) feed-forward chunk ---------
        h1 = jnp.maximum(jnp.dot(x1_ref[...].astype(cdt), w1_ref[...],
                                 preferred_element_type=jnp.float32) + b1_ref[...], 0.0)
        ffacc_ref[...] += jnp.dot(h1.astype(cdt), w2_ref[...],
                                  preferred_element_type=jnp.float32)

        # ---- last F-step: second LayerNorm; last layer: final LN + mean -----
        @pl.when(fstep == nf - 1)
        def _finish_layer():
            x2 = _layernorm(x1_ref[...] + ffacc_ref[...] + b2_ref[...],
                            ln2w_ref[...], ln2b_ref[...])
            act_ref[...] = x2                       # carried to the next layer step

            @pl.when(layer == num_layers - 1)
            def _():
                xn = _layernorm(x2, normw_ref[...], normb_ref[...]).reshape(TB, S, D)
                valid = valid_ref[...]              # [TB, S], 1.0 = real token
                ssum = jnp.sum(xn * valid[:, :, None], axis=1)          # [TB, D]
                cnt = jnp.maximum(jnp.sum(valid, axis=1, keepdims=True), 1.0)
                # exact divide (off the hot path; review's parity concern)
                out_ref[...] = (ssum / cnt).astype(out_ref.dtype)

    return kernel


# ----------------------------------------------------------------------------
# Chip-aware tiling / VMEM budgeting
# ----------------------------------------------------------------------------
def _vmem_capacity_bytes():
    try:
        cap = getattr(pltpu.get_tpu_info(), "vmem_capacity_bytes", None)
        if cap:
            return int(cap)
    except Exception:
        pass
    return 64 * 1024 * 1024        # conservative (v7x); v5e/v6e have 128 MiB


def _num_tensorcores():
    try:
        return max(1, int(getattr(jax.devices()[0], "num_cores", 1) or 1))
    except Exception:
        return 1


def _pick_f_tile(F, max_tf=512):
    """F-chunk for the FFN grid axis: full F if small, else the largest
    multiple-of-128 divisor of F not exceeding max_tf."""
    if F <= max_tf:
        return F
    best = None
    for tf in range(128, max_tf + 1, 128):
        if F % tf == 0:
            best = tf
    return best if best is not None else F


def _vmem_estimate(TB, S, D, TF, wbytes):
    """Rough per-grid-step VMEM need: double-buffered blocks + scratch + temps."""
    f32 = 4
    N = TB * S
    per_layer_weights = ((D * 3 * D + D * D + D * TF + TF * D) * wbytes
                         + (3 * D + D + TF + D + 6 * D) * f32)          # biases + LN
    blocks = 2 * (TB * S * D * f32                 # layer-0 activations block
                  + 2 * TB * S * f32               # key-padding bias + valid mask
                  + per_layer_weights
                  + 2 * D * f32                    # final norm w, b
                  + TB * D * f32)                  # output block
    scratch = 4 * N * D * f32                      # act, ctx, x1, ffn accumulator
    temps = N * 3 * D * f32 + N * TF * f32 + 2 * TB * S * S * f32
    return blocks + scratch + temps


def _pick_batch_tile(B, S, D, TF, wbytes, vmem_budget, cores=1):
    """Largest batch tile fitting the VMEM budget.  TB == B, or a multiple of 8
    dividing B, keeps every (TB, ...) BlockSpec legal under the (8,128) rule."""
    cands = sorted({tb for tb in range(1, B + 1)
                    if B % tb == 0 and (tb == B or tb % 8 == 0)}, reverse=True)
    fit = [tb for tb in cands if _vmem_estimate(tb, S, D, TF, wbytes) <= vmem_budget]
    if not fit:
        fit = [cands[-1]]
    tb = fit[0]
    # Multi-TensorCore chips (v7x): the "parallel" batch axis is the only
    # megacore lever -- keep all cores busy if it costs at most a 2x smaller
    # tile.  Single-core chips (v5e/v6e): largest tile (fewest weight re-streams).
    if cores > 1:
        for tb2 in fit:
            if B // tb2 >= cores and tb2 * 2 >= tb:
                return tb2
    return tb


def _const_spec(a):
    nd = a.ndim
    return pl.BlockSpec(tuple(a.shape), lambda b, l, f, nd=nd: (0,) * nd)


def _layer_spec(a):
    # stacked [L, ...] parameter: stream one layer's block per layer grid step
    nz = a.ndim - 1
    return pl.BlockSpec((None,) + tuple(a.shape[1:]),
                        lambda b, l, f, nz=nz: (l,) + (0,) * nz)


# ----------------------------------------------------------------------------
# Wrapper
# ----------------------------------------------------------------------------
@functools.partial(jax.jit, static_argnums=(2,))
def transformer_encoder_forward(src, prepped, nhead):
    """src: [S, B, V] float32 (seq-first, PyTorch convention). Returns [B, D]."""
    S, B, V = src.shape
    D = prepped['emb_w_t'].shape[1]
    L = prepped['wqkv_t'].shape[0]
    F = prepped['w1_t'].shape[2]
    wbytes = jnp.dtype(prepped['wqkv_t'].dtype).itemsize

    TF = _pick_f_tile(F)
    nf = F // TF
    cap = _vmem_capacity_bytes()
    cores = _num_tensorcores()
    TB = _pick_batch_tile(B, S, D, TF, wbytes, int(0.70 * cap), cores)
    num_tiles = B // TB

    est = _vmem_estimate(TB, S, D, TF, wbytes)
    vmem_limit = int(min(0.90 * cap, max(1.3 * est + (4 << 20), 32 << 20)))

    # Padding inferred as "feature vector exactly all-zero" (matches the module's
    # make_src_mask for the Linear-embedding path); a legitimate all-zero token
    # would be masked too.
    src_bf = jnp.transpose(src, (1, 0, 2))                 # [B, S, V]
    pad = jnp.all(src_bf == 0.0, axis=-1)                  # [B, S]
    key_bias = jnp.where(pad, NEG, 0.0).astype(jnp.float32)
    valid = (~pad).astype(jnp.float32)

    # Layer-0-only work (input Linear + positional encoding; dropout = identity
    # in eval) runs in the wrapper so the V-wide src / emb_w / pe never occupy
    # VMEM on the per-layer steps.
    x0 = jnp.dot(src_bf.reshape(B * S, V), prepped['emb_w_t'],
                 preferred_element_type=jnp.float32) + prepped['emb_b']
    x0 = x0.reshape(B, S, D) + prepped['pe'][:S][None, :, :]

    kernel = make_fused_kernel(nhead, L, TB, S, D,
                               compute_dtype=prepped['wqkv_t'].dtype)

    in_arrays = (x0, key_bias, valid,
                 prepped['wqkv_t'], prepped['bqkv'], prepped['wo_t'], prepped['bo'],
                 prepped['ln1w'], prepped['ln1b'],
                 prepped['w1_t'], prepped['b1'], prepped['w2_t'], prepped['b2'],
                 prepped['ln2w'], prepped['ln2b'],
                 prepped['norm_w'], prepped['norm_b'])

    in_specs = [
        pl.BlockSpec((TB, S, D), lambda b, l, f: (b, 0, 0)),    # layer-0 activations
        pl.BlockSpec((TB, S), lambda b, l, f: (b, 0)),          # key-padding bias
        pl.BlockSpec((TB, S), lambda b, l, f: (b, 0)),          # valid mask
        _layer_spec(prepped['wqkv_t']), _layer_spec(prepped['bqkv']),
        _layer_spec(prepped['wo_t']), _layer_spec(prepped['bo']),
        _layer_spec(prepped['ln1w']), _layer_spec(prepped['ln1b']),
        pl.BlockSpec((None, D, TF), lambda b, l, f: (l, 0, f)),  # w1 F-chunk
        pl.BlockSpec((None, 1, TF), lambda b, l, f: (l, 0, f)),  # b1 F-chunk
        pl.BlockSpec((None, TF, D), lambda b, l, f: (l, f, 0)),  # w2 F-chunk
        _layer_spec(prepped['b2']),
        _layer_spec(prepped['ln2w']), _layer_spec(prepped['ln2b']),
        _const_spec(prepped['norm_w']), _const_spec(prepped['norm_b']),
    ]

    return pl.pallas_call(
        kernel,
        grid=(num_tiles, L, nf),
        in_specs=in_specs,
        out_specs=pl.BlockSpec((TB, D), lambda b, l, f: (b, 0)),   # lane-dense [TB, D]
        out_shape=jax.ShapeDtypeStruct((B, D), jnp.float32),
        scratch_shapes=[pltpu.VMEM((TB * S, D), jnp.float32),   # activations across layers
                        pltpu.VMEM((TB * S, D), jnp.float32),   # per-layer attention ctx
                        pltpu.VMEM((TB * S, D), jnp.float32),   # x1 (post-attn LN) across F
                        pltpu.VMEM((TB * S, D), jnp.float32)],  # FFN accumulator
        compiler_params=pltpu.CompilerParams(
            dimension_semantics=("parallel", "arbitrary", "arbitrary"),
            vmem_limit_bytes=vmem_limit),
    )(*in_arrays)


# ----------------------------------------------------------------------------
# Parameters: PyTorch-convention init + host-side prep
# ----------------------------------------------------------------------------
def init_params(key, d_model, in_vocab, nhead, num_layers, dim_ff, max_len):
    if d_model % nhead != 0:                               # same rounding as the module
        d_model = d_model + nhead - d_model % nhead

    counter = [0]

    def rnd(shape, s=0.05):
        counter[0] += 1
        return jax.random.normal(jax.random.fold_in(key, counter[0]), shape, jnp.float32) * s

    params = {
        'emb_w': rnd((d_model, in_vocab)),
        'emb_b': rnd((1, d_model)),
        'norm_w': 1.0 + rnd((1, d_model), 0.01),
        'norm_b': rnd((1, d_model), 0.01),
    }

    position = jnp.arange(max_len, dtype=jnp.float32)[:, None]
    div_term = jnp.exp(jnp.arange(0, d_model, 2, dtype=jnp.float32)
                       * (-math.log(10000.0) / d_model))
    pe = jnp.zeros((max_len, d_model), jnp.float32)
    pe = pe.at[:, 0::2].set(jnp.sin(position * div_term))
    pe = pe.at[:, 1::2].set(jnp.cos(position * div_term))
    params['pe'] = pe

    layers = []
    for _ in range(num_layers):
        layers.append({
            'wqkv': rnd((3 * d_model, d_model)),
            'bqkv': rnd((1, 3 * d_model)),
            'wo':   rnd((d_model, d_model)),
            'bo':   rnd((1, d_model)),
            'ln1w': 1.0 + rnd((1, d_model), 0.01),
            'ln1b': rnd((1, d_model), 0.01),
            'w1':   rnd((dim_ff, d_model)),
            'b1':   rnd((1, dim_ff)),
            'w2':   rnd((d_model, dim_ff)),
            'b2':   rnd((1, d_model)),
            'ln2w': 1.0 + rnd((1, d_model), 0.01),
            'ln2b': rnd((1, d_model), 0.01),
        })
    params['layers'] = layers
    return params, d_model


def prepare_params(params, nhead, weight_dtype=jnp.bfloat16):
    """Pre-transpose to [in, out], stack per-layer params along a leading layer
    axis, fold 1/sqrt(Dh) into the Q projection, and cast the four big matmul
    weights to `weight_dtype` (streamed per layer; halves HBM + VMEM traffic)."""
    d_model = params['emb_w'].shape[0]
    scale = 1.0 / math.sqrt(d_model // nhead)
    layers = params['layers']
    stack = lambda name: jnp.stack([lp[name] for lp in layers])
    stack_t = lambda name: jnp.stack([lp[name].T for lp in layers])
    wqkv_t = stack_t('wqkv')                                   # [L, D, 3D]
    wqkv_t = wqkv_t.at[:, :, :d_model].multiply(scale)         # fold 1/sqrt(Dh) into Q
    bqkv = stack('bqkv').at[:, :, :d_model].multiply(scale)
    return {
        'emb_w_t': params['emb_w'].T,                          # [V, D] (used in wrapper)
        'emb_b': params['emb_b'],                              # [1, D]
        'pe': params['pe'],                                    # [max_len, D]
        'norm_w': params['norm_w'], 'norm_b': params['norm_b'],
        'wqkv_t': wqkv_t.astype(weight_dtype),                 # [L, D, 3D]
        'bqkv': bqkv,                                          # [L, 1, 3D] f32
        'wo_t': stack_t('wo').astype(weight_dtype),            # [L, D, D]
        'bo': stack('bo'),
        'ln1w': stack('ln1w'), 'ln1b': stack('ln1b'),
        'w1_t': stack_t('w1').astype(weight_dtype),            # [L, D, F]
        'b1': stack('b1'),
        'w2_t': stack_t('w2').astype(weight_dtype),            # [L, F, D]
        'b2': stack('b2'),
        'ln2w': stack('ln2w'), 'ln2b': stack('ln2b'),
    }


def quantize_matmul_weights(params, dtype=jnp.bfloat16):
    """Round-trip the big matmul weights through `dtype` so the f32 reference
    sees the same quantized weights the kernel streams."""
    q = dict(params)
    q['layers'] = [{k: (v.astype(dtype).astype(jnp.float32)
                        if k in ('wqkv', 'wo', 'w1', 'w2') else v)
                    for k, v in lp.items()} for lp in params['layers']]
    return q


# ----------------------------------------------------------------------------
# Pure-JAX reference (PyTorch-convention math, f32) for the correctness check
# ----------------------------------------------------------------------------
def reference_forward(src, params, nhead):
    S, B, V = src.shape
    D = params['emb_w'].shape[0]
    Dh = D // nhead
    pad = jnp.all(src == 0, axis=-1).T                     # [B, S]
    bias = jnp.where(pad, NEG, 0.0)

    def ln(x, w, b):
        mu = x.mean(-1, keepdims=True)
        var = ((x - mu) ** 2).mean(-1, keepdims=True)
        return (x - mu) / jnp.sqrt(var + LN_EPS) * w[0] + b[0]

    x = src @ params['emb_w'].T + params['emb_b'][0]
    x = x + params['pe'][:S][:, None, :]
    for lp in params['layers']:
        qkv = x @ lp['wqkv'].T + lp['bqkv'][0]
        q, k, v = qkv[..., :D], qkv[..., D:2 * D], qkv[..., 2 * D:]
        split = lambda t: t.reshape(S, B, nhead, Dh).transpose(1, 2, 0, 3)
        qh, kh, vh = split(q), split(k), split(v)
        scores = jnp.einsum('bhqd,bhkd->bhqk', qh, kh) / math.sqrt(Dh)
        scores = scores + bias[:, None, None, :]
        attn = jax.nn.softmax(scores, axis=-1)
        ctx = jnp.einsum('bhqk,bhkd->bhqd', attn, vh).transpose(2, 0, 1, 3).reshape(S, B, D)
        x = ln(x + ctx @ lp['wo'].T + lp['bo'][0], lp['ln1w'], lp['ln1b'])
        ff = jnp.maximum(x @ lp['w1'].T + lp['b1'][0], 0.0) @ lp['w2'].T + lp['b2'][0]
        x = ln(x + ff, lp['ln2w'], lp['ln2b'])
    x = ln(x, params['norm_w'], params['norm_b'])
    validf = (~pad).astype(jnp.float32)
    memory = x * validf.T[:, :, None]
    return memory.sum(0) / validf.sum(-1, keepdims=True)


if __name__ == "__main__":
    # Small shapes: seq=8, batch=2, in_vocab_size (feature dim)=12,
    # d_model=30 -> rounded to 32 (nhead=4), 2 layers, dim_feedforward=64.
    S, B, V = 8, 2, 12
    nhead, num_layers, dim_ff = 4, 2, 64

    key = jax.random.PRNGKey(0)
    kp, kx = jax.random.split(key)
    params, d_model = init_params(kp, 30, V, nhead, num_layers, dim_ff, max_len=S)

    # The reference uses the same bf16-quantized matmul weights the kernel streams,
    # so the remaining diff is bf16 rounding of the matmul activations plus the
    # approx softmax reciprocal (typically ~1e-3 .. 1e-2 over 2 layers).
    params_q = quantize_matmul_weights(params, jnp.bfloat16)
    prepped = prepare_params(params_q, nhead, weight_dtype=jnp.bfloat16)

    src = jax.random.normal(kx, (S, B, V), jnp.float32)
    src = src.at[6:, 0, :].set(0.0)        # batch 0: last 2 positions padded (all-zero features)

    out = transformer_encoder_forward(src, prepped, nhead)
    out = jax.block_until_ready(out)

    ref = reference_forward(src, params_q, nhead)
    assert out.shape == (B, d_model)
    assert bool(jnp.all(jnp.isfinite(out)))
    err = float(jnp.max(jnp.abs(out - ref)))
    assert err < 5e-2, f"mismatch vs reference: {err}"
    print("KERNEL_OK")
</pallas_src>

<mosaic_0001>
module attributes {stable_mosaic.version = 11 : i64} {
  func.func @kernel(%arg0: i32, %arg1: i32, %arg2: i32, %arg3: memref<2x8x32xf32, #tpu.memory_space<vmem>>, %arg4: memref<2x8xf32, #tpu.memory_space<vmem>>, %arg5: memref<2x8xf32, #tpu.memory_space<vmem>>, %arg6: memref<1x32x96xbf16, #tpu.memory_space<vmem>>, %arg7: memref<1x1x96xf32, #tpu.memory_space<vmem>>, %arg8: memref<1x32x32xbf16, #tpu.memory_space<vmem>>, %arg9: memref<1x1x32xf32, #tpu.memory_space<vmem>>, %arg10: memref<1x1x32xf32, #tpu.memory_space<vmem>>, %arg11: memref<1x1x32xf32, #tpu.memory_space<vmem>>, %arg12: memref<1x32x64xbf16, #tpu.memory_space<vmem>>, %arg13: memref<1x1x64xf32, #tpu.memory_space<vmem>>, %arg14: memref<1x64x32xbf16, #tpu.memory_space<vmem>>, %arg15: memref<1x1x32xf32, #tpu.memory_space<vmem>>, %arg16: memref<1x1x32xf32, #tpu.memory_space<vmem>>, %arg17: memref<1x1x32xf32, #tpu.memory_space<vmem>>, %arg18: memref<1x32xf32, #tpu.memory_space<vmem>>, %arg19: memref<1x32xf32, #tpu.memory_space<vmem>>, %arg20: memref<2x32xf32, #tpu.memory_space<vmem>>, %arg21: memref<16x32xf32, #tpu.memory_space<vmem>>, %arg22: memref<16x32xf32, #tpu.memory_space<vmem>>, %arg23: memref<16x32xf32, #tpu.memory_space<vmem>>, %arg24: memref<16x32xf32, #tpu.memory_space<vmem>>) attributes {dimension_semantics = [#tpu.dimension_semantics<parallel>, #tpu.dimension_semantics<arbitrary>, #tpu.dimension_semantics<arbitrary>], iteration_bounds = array<i64: 1, 2, 1>, scalar_prefetch = 0 : i64, scratch_operands = 4 : i64, tpu.core_type = #tpu.core_type<tc>, window_params = [{transform_indices = @transform_0, window_bounds = array<i64: 2, 8, 32>}, {transform_indices = @transform_1, window_bounds = array<i64: 2, 8>}, {transform_indices = @transform_2, window_bounds = array<i64: 2, 8>}, {transform_indices = @transform_3, window_bounds = array<i64: 1, 32, 96>}, {transform_indices = @transform_4, window_bounds = array<i64: 1, 1, 96>}, {transform_indices = @transform_5, window_bounds = array<i64: 1, 32, 32>}, {transform_indices = @transform_6, window_bounds = array<i64: 1, 1, 32>}, {transform_indices = @transform_7, window_bounds = array<i64: 1, 1, 32>}, {transform_indices = @transform_8, window_bounds = array<i64: 1, 1, 32>}, {transform_indices = @transform_9, window_bounds = array<i64: 1, 32, 64>}, {transform_indices = @transform_10, window_bounds = array<i64: 1, 1, 64>}, {transform_indices = @transform_11, window_bounds = array<i64: 1, 64, 32>}, {transform_indices = @transform_12, window_bounds = array<i64: 1, 1, 32>}, {transform_indices = @transform_13, window_bounds = array<i64: 1, 1, 32>}, {transform_indices = @transform_14, window_bounds = array<i64: 1, 1, 32>}, {pipeline_mode = #tpu.pipeline_mode<synchronous>, transform_indices = @transform_15, window_bounds = array<i64: 1, 32>}, {pipeline_mode = #tpu.pipeline_mode<synchronous>, transform_indices = @transform_16, window_bounds = array<i64: 1, 32>}, {transform_indices = @transform_17, window_bounds = array<i64: 2, 32>}]} {
    %c0_i32 = arith.constant 0 : i32
    %0 = arith.cmpi eq, %arg2, %c0_i32 : i32
    %1 = arith.extui %0 : i1 to i32
    %c0_i32_0 = arith.constant 0 : i32
    %2 = arith.cmpi ne, %1, %c0_i32_0 : i32
    scf.if %2 {
      %c0_i32_19 = arith.constant 0 : i32
      %24 = arith.cmpi eq, %arg1, %c0_i32_19 : i32
      %25 = arith.extui %24 : i1 to i32
      %c0_i32_20 = arith.constant 0 : i32
      %26 = arith.cmpi ne, %25, %c0_i32_20 : i32
      scf.if %26 {
        %c0_78 = arith.constant 0 : index
        %c0_79 = arith.constant 0 : index
        %c0_80 = arith.constant 0 : index
        %184 = vector.load %arg3[%c0_78, %c0_79, %c0_80] : memref<2x8x32xf32, #tpu.memory_space<vmem>>, vector<2x8x32xf32>
        %185 = vector.shape_cast %184 : vector<2x8x32xf32> to vector<16x32xf32>
        %c0_81 = arith.constant 0 : index
        %c0_82 = arith.constant 0 : index
        %186 = vector.load %arg21[%c0_81, %c0_82] : memref<16x32xf32, #tpu.memory_space<vmem>>, vector<16x32xf32>
        tpu.vector_store %arg21[%c0_81, %c0_82], %185 {strides = array<i32>} : memref<16x32xf32, #tpu.memory_space<vmem>>, vector<16x32xf32>,
      } else {
      }
      %c0_21 = arith.constant 0 : index
      %c0_22 = arith.constant 0 : index
      %27 = vector.load %arg21[%c0_21, %c0_22] : memref<16x32xf32, #tpu.memory_space<vmem>>, vector<16x32xf32>
      %c0_23 = arith.constant 0 : index
      %c0_24 = arith.constant 0 : index
      %28 = vector.load %arg4[%c0_23, %c0_24] : memref<2x8xf32, #tpu.memory_space<vmem>>, vector<2x8xf32>
      %29 = arith.truncf %27 : vector<16x32xf32> to vector<16x32xbf16>
      %c0_25 = arith.constant 0 : index
      %c0_26 = arith.constant 0 : index
      %c0_27 = arith.constant 0 : index
      %30 = vector.load %arg6[%c0_25, %c0_26, %c0_27] : memref<1x32x96xbf16, #tpu.memory_space<vmem>>, vector<1x32x96xbf16>
      %31 = vector.shape_cast %30 : vector<1x32x96xbf16> to vector<32x96xbf16>
      %cst_28 = arith.constant dense<0.000000e+00> : vector<16x96xf32>
      %32 = tpu.matmul %29, %31, %cst_28 {dimension_numbers = #tpu.dot_dimension_numbers<[1], [0], [0], [1], [0, 0, 1, 1], [], []>} : vector<16x32xbf16>, vector<32x96xbf16>, vector<16x96xf32> -> vector<16x96xf32>
      %c0_29 = arith.constant 0 : index
      %c0_30 = arith.constant 0 : index
      %c0_31 = arith.constant 0 : index
      %33 = vector.load %arg7[%c0_29, %c0_30, %c0_31] : memref<1x1x96xf32, #tpu.memory_space<vmem>>, vector<1x1x96xf32>
      %34 = vector.shape_cast %33 : vector<1x1x96xf32> to vector<1x96xf32>
      %35 = vector.broadcast %34 : vector<1x96xf32> to vector<16x96xf32>
      %36 = arith.addf %32, %35 : vector<16x96xf32>
      %37 = vector.extract_strided_slice %36 {offsets = [0, 0], sizes = [16, 8], strides = [1, 1]} : vector<16x96xf32> to vector<16x8xf32>
      %38 = vector.shape_cast %37 : vector<16x8xf32> to vector<2x8x8xf32>
      %39 = arith.truncf %38 : vector<2x8x8xf32> to vector<2x8x8xbf16>
      %40 = vector.extract_strided_slice %36 {offsets = [0, 32], sizes = [16, 8], strides = [1, 1]} : vector<16x96xf32> to vector<16x8xf32>
      %41 = vector.shape_cast %40 : vector<16x8xf32> to vector<2x8x8xf32>
      %42 = arith.truncf %41 : vector<2x8x8xf32> to vector<2x8x8xbf16>
      %43 = vector.extract_strided_slice %36 {offsets = [0, 64], sizes = [16, 8], strides = [1, 1]} : vector<16x96xf32> to vector<16x8xf32>
      %44 = vector.shape_cast %43 : vector<16x8xf32> to vector<2x8x8xf32>
      %45 = arith.truncf %44 : vector<2x8x8xf32> to vector<2x8x8xbf16>
      "tpu.trace_start"() <{level = 10 : i32, message = "bqd,bkd->bqk"}> : () -> ()
      %cst_32 = arith.constant dense<0.000000e+00> : vector<2x8x8xf32>
      %46 = tpu.matmul %39, %42, %cst_32 {dimension_numbers = #tpu.dot_dimension_numbers<[2], [2], [1], [1], [0, 0, 0, 1, 1, 1], [0], [0]>} : vector<2x8x8xbf16>, vector<2x8x8xbf16>, vector<2x8x8xf32> -> vector<2x8x8xf32>
      "tpu.trace_stop"() : () -> ()
      %47 = vector.shape_cast %28 : vector<2x8xf32> to vector<2x1x8xf32>
      %48 = vector.broadcast %47 : vector<2x1x8xf32> to vector<2x8x8xf32>
      %49 = arith.addf %46, %48 : vector<2x8x8xf32>
      %cst_33 = arith.constant dense<0xFF800000> : vector<2x8xf32>
      %50 = vector.multi_reduction <maximumf>, %49, %cst_33 [2] : vector<2x8x8xf32> to vector<2x8xf32>
      %51 = vector.shape_cast %50 : vector<2x8xf32> to vector<2x8x1xf32>
      %52 = vector.broadcast %51 : vector<2x8x1xf32> to vector<2x8x8xf32>
      %53 = arith.subf %49, %52 : vector<2x8x8xf32>
      %54 = math.exp %53 : vector<2x8x8xf32>
      %cst_34 = arith.constant dense<0.000000e+00> : vector<2x8xf32>
      %55 = vector.multi_reduction <add>, %54, %cst_34 [2] : vector<2x8x8xf32> to vector<2x8xf32>
      %56 = vector.shape_cast %55 : vector<2x8xf32> to vector<2x8x1xf32>
      %57 = tpu.reciprocal %56 {approx = true} : vector<2x8x1xf32> -> vector<2x8x1xf32>
      %58 = vector.broadcast %57 : vector<2x8x1xf32> to vector<2x8x8xf32>
      %59 = arith.mulf %54, %58 : vector<2x8x8xf32>
      %60 = arith.truncf %59 : vector<2x8x8xf32> to vector<2x8x8xbf16>
      "tpu.trace_start"() <{level = 10 : i32, message = "bqk,bkd->bqd"}> : () -> ()
      %cst_35 = arith.constant dense<0.000000e+00> : vector<2x8x8xf32>
      %61 = tpu.matmul %60, %45, %cst_35 {dimension_numbers = #tpu.dot_dimension_numbers<[2], [1], [1], [2], [0, 0, 0, 1, 1, 2], [0], [0]>} : vector<2x8x8xbf16>, vector<2x8x8xbf16>, vector<2x8x8xf32> -> vector<2x8x8xf32>
      "tpu.trace_stop"() : () -> ()
      %62 = vector.shape_cast %61 : vector<2x8x8xf32> to vector<16x8xf32>
      %c0_36 = arith.constant 0 : index
      %c0_37 = arith.constant 0 : index
      %63 = vector.load %arg22[%c0_36, %c0_37] : memref<16x32xf32, #tpu.memory_space<vmem>>, vector<16x8xf32>
      tpu.vector_store %arg22[%c0_36, %c0_37], %62 {strides = array<i32>} : memref<16x32xf32, #tpu.memory_space<vmem>>, vector<16x8xf32>,
      %64 = vector.extract_strided_slice %36 {offsets = [0, 8], sizes = [16, 8], strides = [1, 1]} : vector<16x96xf32> to vector<16x8xf32>
      %65 = vector.shape_cast %64 : vector<16x8xf32> to vector<2x8x8xf32>
      %66 = arith.truncf %65 : vector<2x8x8xf32> to vector<2x8x8xbf16>
      %67 = vector.extract_strided_slice %36 {offsets = [0, 40], sizes = [16, 8], strides = [1, 1]} : vector<16x96xf32> to vector<16x8xf32>
      %68 = vector.shape_cast %67 : vector<16x8xf32> to vector<2x8x8xf32>
      %69 = arith.truncf %68 : vector<2x8x8xf32> to vector<2x8x8xbf16>
      %70 = vector.extract_strided_slice %36 {offsets = [0, 72], sizes = [16, 8], strides = [1, 1]} : vector<16x96xf32> to vector<16x8xf32>
      %71 = vector.shape_cast %70 : vector<16x8xf32> to vector<2x8x8xf32>
      %72 = arith.truncf %71 : vector<2x8x8xf32> to vector<2x8x8xbf16>
      "tpu.trace_start"() <{level = 10 : i32, message = "bqd,bkd->bqk"}> : () -> ()
      %cst_38 = arith.constant dense<0.000000e+00> : vector<2x8x8xf32>
      %73 = tpu.matmul %66, %69, %cst_38 {dimension_numbers = #tpu.dot_dimension_numbers<[2], [2], [1], [1], [0, 0, 0, 1, 1, 1], [0], [0]>} : vector<2x8x8xbf16>, vector<2x8x8xbf16>, vector<2x8x8xf32> -> vector<2x8x8xf32>
      "tpu.trace_stop"() : () -> ()
      %74 = vector.shape_cast %28 : vector<2x8xf32> to vector<2x1x8xf32>
      %75 = vector.broadcast %74 : vector<2x1x8xf32> to vector<2x8x8xf32>
      %76 = arith.addf %73, %75 : vector<2x8x8xf32>
      %cst_39 = arith.constant dense<0xFF800000> : vector<2x8xf32>
      %77 = vector.multi_reduction <maximumf>, %76, %cst_39 [2] : vector<2x8x8xf32> to vector<2x8xf32>
      %78 = vector.shape_cast %77 : vector<2x8xf32> to vector<2x8x1xf32>
      %79 = vector.broadcast %78 : vector<2x8x1xf32> to vector<2x8x8xf32>
      %80 = arith.subf %76, %79 : vector<2x8x8xf32>
      %81 = math.exp %80 : vector<2x8x8xf32>
      %cst_40 = arith.constant dense<0.000000e+00> : vector<2x8xf32>
      %82 = vector.multi_reduction <add>, %81, %cst_40 [2] : vector<2x8x8xf32> to vector<2x8xf32>
      %83 = vector.shape_cast %82 : vector<2x8xf32> to vector<2x8x1xf32>
      %84 = tpu.reciprocal %83 {approx = true} : vector<2x8x1xf32> -> vector<2x8x1xf32>
      %85 = vector.broadcast %84 : vector<2x8x1xf32> to vector<2x8x8xf32>
      %86 = arith.mulf %81, %85 : vector<2x8x8xf32>
      %87 = arith.truncf %86 : vector<2x8x8xf32> to vector<2x8x8xbf16>
      "tpu.trace_start"() <{level = 10 : i32, message = "bqk,bkd->bqd"}> : () -> ()
      %cst_41 = arith.constant dense<0.000000e+00> : vector<2x8x8xf32>
      %88 = tpu.matmul %87, %72, %cst_41 {dimension_numbers = #tpu.dot_dimension_numbers<[2], [1], [1], [2], [0, 0, 0, 1, 1, 2], [0], [0]>} : vector<2x8x8xbf16>, vector<2x8x8xbf16>, vector<2x8x8xf32> -> vector<2x8x8xf32>
      "tpu.trace_stop"() : () -> ()
      %89 = vector.shape_cast %88 : vector<2x8x8xf32> to vector<16x8xf32>
      %c0_42 = arith.constant 0 : index
      %c8 = arith.constant 8 : index
      %90 = vector.load %arg22[%c0_42, %c8] : memref<16x32xf32, #tpu.memory_space<vmem>>, vector<16x8xf32>
      tpu.vector_store %arg22[%c0_42, %c8], %89 {strides = array<i32>} : memref<16x32xf32, #tpu.memory_space<vmem>>, vector<16x8xf32>,
      %91 = vector.extract_strided_slice %36 {offsets = [0, 16], sizes = [16, 8], strides = [1, 1]} : vector<16x96xf32> to vector<16x8xf32>
      %92 = vector.shape_cast %91 : vector<16x8xf32> to vector<2x8x8xf32>
      %93 = arith.truncf %92 : vector<2x8x8xf32> to vector<2x8x8xbf16>
      %94 = vector.extract_strided_slice %36 {offsets = [0, 48], sizes = [16, 8], strides = [1, 1]} : vector<16x96xf32> to vector<16x8xf32>
      %95 = vector.shape_cast %94 : vector<16x8xf32> to vector<2x8x8xf32>
      %96 = arith.truncf %95 : vector<2x8x8xf32> to vector<2x8x8xbf16>
      %97 = vector.extract_strided_slice %36 {offsets = [0, 80], sizes = [16, 8], strides = [1, 1]} : vector<16x96xf32> to vector<16x8xf32>
      %98 = vector.shape_cast %97 : vector<16x8xf32> to vector<2x8x8xf32>
      %99 = arith.truncf %98 : vector<2x8x8xf32> to vector<2x8x8xbf16>
      "tpu.trace_start"() <{level = 10 : i32, message = "bqd,bkd->bqk"}> : () -> ()
      %cst_43 = arith.constant dense<0.000000e+00> : vector<2x8x8xf32>
      %100 = tpu.matmul %93, %96, %cst_43 {dimension_numbers = #tpu.dot_dimension_numbers<[2], [2], [1], [1], [0, 0, 0, 1, 1, 1], [0], [0]>} : vector<2x8x8xbf16>, vector<2x8x8xbf16>, vector<2x8x8xf32> -> vector<2x8x8xf32>
      "tpu.trace_stop"() : () -> ()
      %101 = vector.shape_cast %28 : vector<2x8xf32> to vector<2x1x8xf32>
      %102 = vector.broadcast %101 : vector<2x1x8xf32> to vector<2x8x8xf32>
      %103 = arith.addf %100, %102 : vector<2x8x8xf32>
      %cst_44 = arith.constant dense<0xFF800000> : vector<2x8xf32>
      %104 = vector.multi_reduction <maximumf>, %103, %cst_44 [2] : vector<2x8x8xf32> to vector<2x8xf32>
      %105 = vector.shape_cast %104 : vector<2x8xf32> to vector<2x8x1xf32>
      %106 = vector.broadcast %105 : vector<2x8x1xf32> to vector<2x8x8xf32>
      %107 = arith.subf %103, %106 : vector<2x8x8xf32>
      %108 = math.exp %107 : vector<2x8x8xf32>
      %cst_45 = arith.constant dense<0.000000e+00> : vector<2x8xf32>
      %109 = vector.multi_reduction <add>, %108, %cst_45 [2] : vector<2x8x8xf32> to vector<2x8xf32>
      %110 = vector.shape_cast %109 : vector<2x8xf32> to vector<2x8x1xf32>
      %111 = tpu.reciprocal %110 {approx = true} : vector<2x8x1xf32> -> vector<2x8x1xf32>
      %112 = vector.broadcast %111 : vector<2x8x1xf32> to vector<2x8x8xf32>
      %113 = arith.mulf %108, %112 : vector<2x8x8xf32>
      %114 = arith.truncf %113 : vector<2x8x8xf32> to vector<2x8x8xbf16>
      "tpu.trace_start"() <{level = 10 : i32, message = "bqk,bkd->bqd"}> : () -> ()
      %cst_46 = arith.constant dense<0.000000e+00> : vector<2x8x8xf32>
      %115 = tpu.matmul %114, %99, %cst_46 {dimension_numbers = #tpu.dot_dimension_numbers<[2], [1], [1], [2], [0, 0, 0, 1, 1, 2], [0], [0]>} : vector<2x8x8xbf16>, vector<2x8x8xbf16>, vector<2x8x8xf32> -> vector<2x8x8xf32>
      "tpu.trace_stop"() : () -> ()
      %116 = vector.shape_cast %115 : vector<2x8x8xf32> to vector<16x8xf32>
      %c0_47 = arith.constant 0 : index
      %c16 = arith.constant 16 : index
      %117 = vector.load %arg22[%c0_47, %c16] : memref<16x32xf32, #tpu.memory_space<vmem>>, vector<16x8xf32>
      tpu.vector_store %arg22[%c0_47, %c16], %116 {strides = array<i32>} : memref<16x32xf32, #tpu.memory_space<vmem>>, vector<16x8xf32>,
      %118 = vector.extract_strided_slice %36 {offsets = [0, 24], sizes = [16, 8], strides = [1, 1]} : vector<16x96xf32> to vector<16x8xf32>
      %119 = vector.shape_cast %118 : vector<16x8xf32> to vector<2x8x8xf32>
      %120 = arith.truncf %119 : vector<2x8x8xf32> to vector<2x8x8xbf16>
      %121 = vector.extract_strided_slice %36 {offsets = [0, 56], sizes = [16, 8], strides = [1, 1]} : vector<16x96xf32> to vector<16x8xf32>
      %122 = vector.shape_cast %121 : vector<16x8xf32> to vector<2x8x8xf32>
      %123 = arith.truncf %122 : vector<2x8x8xf32> to vector<2x8x8xbf16>
      %124 = vector.extract_strided_slice %36 {offsets = [0, 88], sizes = [16, 8], strides = [1, 1]} : vector<16x96xf32> to vector<16x8xf32>
      %125 = vector.shape_cast %124 : vector<16x8xf32> to vector<2x8x8xf32>
      %126 = arith.truncf %125 : vector<2x8x8xf32> to vector<2x8x8xbf16>
      "tpu.trace_start"() <{level = 10 : i32, message = "bqd,bkd->bqk"}> : () -> ()
      %cst_48 = arith.constant dense<0.000000e+00> : vector<2x8x8xf32>
      %127 = tpu.matmul %120, %123, %cst_48 {dimension_numbers = #tpu.dot_dimension_numbers<[2], [2], [1], [1], [0, 0, 0, 1, 1, 1], [0], [0]>} : vector<2x8x8xbf16>, vector<2x8x8xbf16>, vector<2x8x8xf32> -> vector<2x8x8xf32>
      "tpu.trace_stop"() : () -> ()
      %128 = vector.shape_cast %28 : vector<2x8xf32> to vector<2x1x8xf32>
      %129 = vector.broadcast %128 : vector<2x1x8xf32> to vector<2x8x8xf32>
      %130 = arith.addf %127, %129 : vector<2x8x8xf32>
      %cst_49 = arith.constant dense<0xFF800000> : vector<2x8xf32>
      %131 = vector.multi_reduction <maximumf>, %130, %cst_49 [2] : vector<2x8x8xf32> to vector<2x8xf32>
      %132 = vector.shape_cast %131 : vector<2x8xf32> to vector<2x8x1xf32>
      %133 = vector.broadcast %132 : vector<2x8x1xf32> to vector<2x8x8xf32>
      %134 = arith.subf %130, %133 : vector<2x8x8xf32>
      %135 = math.exp %134 : vector<2x8x8xf32>
      %cst_50 = arith.constant dense<0.000000e+00> : vector<2x8xf32>
      %136 = vector.multi_reduction <add>, %135, %cst_50 [2] : vector<2x8x8xf32> to vector<2x8xf32>
      %137 = vector.shape_cast %136 : vector<2x8xf32> to vector<2x8x1xf32>
      %138 = tpu.reciprocal %137 {approx = true} : vector<2x8x1xf32> -> vector<2x8x1xf32>
      %139 = vector.broadcast %138 : vector<2x8x1xf32> to vector<2x8x8xf32>
      %140 = arith.mulf %135, %139 : vector<2x8x8xf32>
      %141 = arith.truncf %140 : vector<2x8x8xf32> to vector<2x8x8xbf16>
      "tpu.trace_start"() <{level = 10 : i32, message = "bqk,bkd->bqd"}> : () -> ()
      %cst_51 = arith.constant dense<0.000000e+00> : vector<2x8x8xf32>
      %142 = tpu.matmul %141, %126, %cst_51 {dimension_numbers = #tpu.dot_dimension_numbers<[2], [1], [1], [2], [0, 0, 0, 1, 1, 2], [0], [0]>} : vector<2x8x8xbf16>, vector<2x8x8xbf16>, vector<2x8x8xf32> -> vector<2x8x8xf32>
      "tpu.trace_stop"() : () -> ()
      %143 = vector.shape_cast %142 : vector<2x8x8xf32> to vector<16x8xf32>
      %c0_52 = arith.constant 0 : index
      %c24 = arith.constant 24 : index
      %144 = vector.load %arg22[%c0_52, %c24] : memref<16x32xf32, #tpu.memory_space<vmem>>, vector<16x8xf32>
      tpu.vector_store %arg22[%c0_52, %c24], %143 {strides = array<i32>} : memref<16x32xf32, #tpu.memory_space<vmem>>, vector<16x8xf32>,
      %c0_53 = arith.constant 0 : index
      %c0_54 = arith.constant 0 : index
      %145 = vector.load %arg22[%c0_53, %c0_54] : memref<16x32xf32, #tpu.memory_space<vmem>>, vector<16x32xf32>
      %146 = arith.truncf %145 : vector<16x32xf32> to vector<16x32xbf16>
      %c0_55 = arith.constant 0 : index
      %c0_56 = arith.constant 0 : index
      %c0_57 = arith.constant 0 : index
      %147 = vector.load %arg8[%c0_55, %c0_56, %c0_57] : memref<1x32x32xbf16, #tpu.memory_space<vmem>>, vector<1x32x32xbf16>
      %148 = vector.shape_cast %147 : vector<1x32x32xbf16> to vector<32x32xbf16>
      %cst_58 = arith.constant dense<0.000000e+00> : vector<16x32xf32>
      %149 = tpu.matmul %146, %148, %cst_58 {dimension_numbers = #tpu.dot_dimension_numbers<[1], [0], [0], [1], [0, 0, 1, 1], [], []>} : vector<16x32xbf16>, vector<32x32xbf16>, vector<16x32xf32> -> vector<16x32xf32>
      %c0_59 = arith.constant 0 : index
      %c0_60 = arith.constant 0 : index
      %c0_61 = arith.constant 0 : index
      %150 = vector.load %arg9[%c0_59, %c0_60, %c0_61] : memref<1x1x32xf32, #tpu.memory_space<vmem>>, vector<1x1x32xf32>
      %151 = vector.shape_cast %150 : vector<1x1x32xf32> to vector<1x32xf32>
      %152 = vector.broadcast %151 : vector<1x32xf32> to vector<16x32xf32>
      %153 = arith.addf %149, %152 : vector<16x32xf32>
      %154 = arith.addf %27, %153 : vector<16x32xf32>
      %c0_62 = arith.constant 0 : index
      %c0_63 = arith.constant 0 : index
      %c0_64 = arith.constant 0 : index
      %155 = vector.load %arg10[%c0_62, %c0_63, %c0_64] : memref<1x1x32xf32, #tpu.memory_space<vmem>>, vector<1x1x32xf32>
      %156 = vector.shape_cast %155 : vector<1x1x32xf32> to vector<1x32xf32>
      %c0_65 = arith.constant 0 : index
      %c0_66 = arith.constant 0 : index
      %c0_67 = arith.constant 0 : index
      %157 = vector.load %arg11[%c0_65, %c0_66, %c0_67] : memref<1x1x32xf32, #tpu.memory_space<vmem>>, vector<1x1x32xf32>
      %158 = vector.shape_cast %157 : vector<1x1x32xf32> to vector<1x32xf32>
      %cst_68 = arith.constant dense<0.000000e+00> : vector<16xf32>
      %159 = vector.multi_reduction <add>, %154, %cst_68 [1] : vector<16x32xf32> to vector<16xf32>
      %160 = vector.shape_cast %159 : vector<16xf32> to vector<16x1xf32>
      %cst_69 = arith.constant 3.200000e+01 : f32
      %161 = vector.broadcast %cst_69 : f32 to vector<16x1xf32>
      %162 = arith.divf %160, %161 : vector<16x1xf32>
      %163 = vector.broadcast %162 : vector<16x1xf32> to vector<16x32xf32>
      %164 = arith.subf %154, %163 : vector<16x32xf32>
      %165 = arith.mulf %164, %164 : vector<16x32xf32>
      %cst_70 = arith.constant dense<0.000000e+00> : vector<16xf32>
      %166 = vector.multi_reduction <add>, %165, %cst_70 [1] : vector<16x32xf32> to vector<16xf32>
      %167 = vector.shape_cast %166 : vector<16xf32> to vector<16x1xf32>
      %cst_71 = arith.constant 3.200000e+01 : f32
      %168 = vector.broadcast %cst_71 : f32 to vector<16x1xf32>
      %169 = arith.divf %167, %168 : vector<16x1xf32>
      %170 = vector.broadcast %162 : vector<16x1xf32> to vector<16x32xf32>
      %171 = arith.subf %154, %170 : vector<16x32xf32>
      %cst_72 = arith.constant 9.99999974E-6 : f32
      %172 = vector.broadcast %cst_72 : f32 to vector<16x1xf32>
      %173 = arith.addf %169, %172 : vector<16x1xf32>
      %174 = math.rsqrt %173 : vector<16x1xf32>
      %175 = vector.broadcast %174 : vector<16x1xf32> to vector<16x32xf32>
      %176 = arith.mulf %171, %175 : vector<16x32xf32>
      %177 = vector.broadcast %156 : vector<1x32xf32> to vector<16x32xf32>
      %178 = arith.mulf %176, %177 : vector<16x32xf32>
      %179 = vector.broadcast %158 : vector<1x32xf32> to vector<16x32xf32>
      %180 = arith.addf %178, %179 : vector<16x32xf32>
      %c0_73 = arith.constant 0 : index
      %c0_74 = arith.constant 0 : index
      %181 = vector.load %arg23[%c0_73, %c0_74] : memref<16x32xf32, #tpu.memory_space<vmem>>, vector<16x32xf32>
      tpu.vector_store %arg23[%c0_73, %c0_74], %180 {strides = array<i32>} : memref<16x32xf32, #tpu.memory_space<vmem>>, vector<16x32xf32>,
      %cst_75 = arith.constant 0.000000e+00 : f32
      %182 = vector.broadcast %cst_75 : f32 to vector<16x32xf32>
      %c0_76 = arith.constant 0 : index
      %c0_77 = arith.constant 0 : index
      %183 = vector.load %arg24[%c0_76, %c0_77] : memref<16x32xf32, #tpu.memory_space<vmem>>, vector<16x32xf32>
      tpu.vector_store %arg24[%c0_76, %c0_77], %182 {strides = array<i32>} : memref<16x32xf32, #tpu.memory_space<vmem>>, vector<16x32xf32>,
    } else {
    }
    %c0 = arith.constant 0 : index
    %c0_1 = arith.constant 0 : index
    %3 = vector.load %arg23[%c0, %c0_1] : memref<16x32xf32, #tpu.memory_space<vmem>>, vector<16x32xf32>
    %4 = arith.truncf %3 : vector<16x32xf32> to vector<16x32xbf16>
    %c0_2 = arith.constant 0 : index
    %c0_3 = arith.constant 0 : index
    %c0_4 = arith.constant 0 : index
    %5 = vector.load %arg12[%c0_2, %c0_3, %c0_4] : memref<1x32x64xbf16, #tpu.memory_space<vmem>>, vector<1x32x64xbf16>
    %6 = vector.shape_cast %5 : vector<1x32x64xbf16> to vector<32x64xbf16>
    %cst = arith.constant dense<0.000000e+00> : vector<16x64xf32>
    %7 = tpu.matmul %4, %6, %cst {dimension_numbers = #tpu.dot_dimension_numbers<[1], [0], [0], [1], [0, 0, 1, 1], [], []>} : vector<16x32xbf16>, vector<32x64xbf16>, vector<16x64xf32> -> vector<16x64xf32>
    %c0_5 = arith.constant 0 : index
    %c0_6 = arith.constant 0 : index
    %c0_7 = arith.constant 0 : index
    %8 = vector.load %arg13[%c0_5, %c0_6, %c0_7] : memref<1x1x64xf32, #tpu.memory_space<vmem>>, vector<1x1x64xf32>
    %9 = vector.shape_cast %8 : vector<1x1x64xf32> to vector<1x64xf32>
    %10 = vector.broadcast %9 : vector<1x64xf32> to vector<16x64xf32>
    %11 = arith.addf %7, %10 : vector<16x64xf32>
    %cst_8 = arith.constant 0.000000e+00 : f32
    %12 = vector.broadcast %cst_8 : f32 to vector<16x64xf32>
    %13 = arith.maximumf %11, %12 : vector<16x64xf32>
    %c0_9 = arith.constant 0 : index
    %c0_10 = arith.constant 0 : index
    %14 = vector.load %arg24[%c0_9, %c0_10] : memref<16x32xf32, #tpu.memory_space<vmem>>, vector<16x32xf32>
    %15 = arith.truncf %13 : vector<16x64xf32> to vector<16x64xbf16>
    %c0_11 = arith.constant 0 : index
    %c0_12 = arith.constant 0 : index
    %c0_13 = arith.constant 0 : index
    %16 = vector.load %arg14[%c0_11, %c0_12, %c0_13] : memref<1x64x32xbf16, #tpu.memory_space<vmem>>, vector<1x64x32xbf16>
    %17 = vector.shape_cast %16 : vector<1x64x32xbf16> to vector<64x32xbf16>
    %cst_14 = arith.constant dense<0.000000e+00> : vector<16x32xf32>
    %18 = tpu.matmul %15, %17, %cst_14 {dimension_numbers = #tpu.dot_dimension_numbers<[1], [0], [0], [1], [0, 0, 1, 1], [], []>} : vector<16x64xbf16>, vector<64x32xbf16>, vector<16x32xf32> -> vector<16x32xf32>
    %19 = arith.addf %14, %18 : vector<16x32xf32>
    %c0_15 = arith.constant 0 : index
    %c0_16 = arith.constant 0 : index
    %20 = vector.load %arg24[%c0_15, %c0_16] : memref<16x32xf32, #tpu.memory_space<vmem>>, vector<16x32xf32>
    tpu.vector_store %arg24[%c0_15, %c0_16], %19 {strides = array<i32>} : memref<16x32xf32, #tpu.memory_space<vmem>>, vector<16x32xf32>,
    %c0_i32_17 = arith.constant 0 : i32
    %21 = arith.cmpi eq, %arg2, %c0_i32_17 : i32
    %22 = arith.extui %21 : i1 to i32
    %c0_i32_18 = arith.constant 0 : i32
    %23 = arith.cmpi ne, %22, %c0_i32_18 : i32
    scf.if %23 {
      %c0_19 = arith.constant 0 : index
      %c0_20 = arith.constant 0 : index
      %24 = vector.load %arg23[%c0_19, %c0_20] : memref<16x32xf32, #tpu.memory_space<vmem>>, vector<16x32xf32>
      %c0_21 = arith.constant 0 : index
      %c0_22 = arith.constant 0 : index
      %25 = vector.load %arg24[%c0_21, %c0_22] : memref<16x32xf32, #tpu.memory_space<vmem>>, vector<16x32xf32>
      %26 = arith.addf %24, %25 : vector<16x32xf32>
      %c0_23 = arith.constant 0 : index
      %c0_24 = arith.constant 0 : index
      %c0_25 = arith.constant 0 : index
      %27 = vector.load %arg15[%c0_23, %c0_24, %c0_25] : memref<1x1x32xf32, #tpu.memory_space<vmem>>, vector<1x1x32xf32>
      %28 = vector.shape_cast %27 : vector<1x1x32xf32> to vector<1x32xf32>
      %29 = vector.broadcast %28 : vector<1x32xf32> to vector<16x32xf32>
      %30 = arith.addf %26, %29 : vector<16x32xf32>
      %c0_26 = arith.constant 0 : index
      %c0_27 = arith.constant 0 : index
      %c0_28 = arith.constant 0 : index
      %31 = vector.load %arg16[%c0_26, %c0_27, %c0_28] : memref<1x1x32xf32, #tpu.memory_space<vmem>>, vector<1x1x32xf32>
      %32 = vector.shape_cast %31 : vector<1x1x32xf32> to vector<1x32xf32>
      %c0_29 = arith.constant 0 : index
      %c0_30 = arith.constant 0 : index
      %c0_31 = arith.constant 0 : index
      %33 = vector.load %arg17[%c0_29, %c0_30, %c0_31] : memref<1x1x32xf32, #tpu.memory_space<vmem>>, vector<1x1x32xf32>
      %34 = vector.shape_cast %33 : vector<1x1x32xf32> to vector<1x32xf32>
      %cst_32 = arith.constant dense<0.000000e+00> : vector<16xf32>
      %35 = vector.multi_reduction <add>, %30, %cst_32 [1] : vector<16x32xf32> to vector<16xf32>
      %36 = vector.shape_cast %35 : vector<16xf32> to vector<16x1xf32>
      %cst_33 = arith.constant 3.200000e+01 : f32
      %37 = vector.broadcast %cst_33 : f32 to vector<16x1xf32>
      %38 = arith.divf %36, %37 : vector<16x1xf32>
      %39 = vector.broadcast %38 : vector<16x1xf32> to vector<16x32xf32>
      %40 = arith.subf %30, %39 : vector<16x32xf32>
      %41 = arith.mulf %40, %40 : vector<16x32xf32>
      %cst_34 = arith.constant dense<0.000000e+00> : vector<16xf32>
      %42 = vector.multi_reduction <add>, %41, %cst_34 [1] : vector<16x32xf32> to vector<16xf32>
      %43 = vector.shape_cast %42 : vector<16xf32> to vector<16x1xf32>
      %cst_35 = arith.constant 3.200000e+01 : f32
      %44 = vector.broadcast %cst_35 : f32 to vector<16x1xf32>
      %45 = arith.divf %43, %44 : vector<16x1xf32>
      %46 = vector.broadcast %38 : vector<16x1xf32> to vector<16x32xf32>
      %47 = arith.subf %30, %46 : vector<16x32xf32>
      %cst_36 = arith.constant 9.99999974E-6 : f32
      %48 = vector.broadcast %cst_36 : f32 to vector<16x1xf32>
      %49 = arith.addf %45, %48 : vector<16x1xf32>
      %50 = math.rsqrt %49 : vector<16x1xf32>
      %51 = vector.broadcast %50 : vector<16x1xf32> to vector<16x32xf32>
      %52 = arith.mulf %47, %51 : vector<16x32xf32>
      %53 = vector.broadcast %32 : vector<1x32xf32> to vector<16x32xf32>
      %54 = arith.mulf %52, %53 : vector<16x32xf32>
      %55 = vector.broadcast %34 : vector<1x32xf32> to vector<16x32xf32>
      %56 = arith.addf %54, %55 : vector<16x32xf32>
      %c0_37 = arith.constant 0 : index
      %c0_38 = arith.constant 0 : index
      %57 = vector.load %arg21[%c0_37, %c0_38] : memref<16x32xf32, #tpu.memory_space<vmem>>, vector<16x32xf32>
      tpu.vector_store %arg21[%c0_37, %c0_38], %56 {strides = array<i32>} : memref<16x32xf32, #tpu.memory_space<vmem>>, vector<16x32xf32>,
      %c1_i32 = arith.constant 1 : i32
      %58 = arith.cmpi eq, %arg1, %c1_i32 : i32
      %59 = arith.extui %58 : i1 to i32
      %c0_i32_39 = arith.constant 0 : i32
      %60 = arith.cmpi ne, %59, %c0_i32_39 : i32
      scf.if %60 {
        %c0_40 = arith.constant 0 : index
        %c0_41 = arith.constant 0 : index
        %61 = vector.load %arg18[%c0_40, %c0_41] : memref<1x32xf32, #tpu.memory_space<vmem>>, vector<1x32xf32>
        %c0_42 = arith.constant 0 : index
        %c0_43 = arith.constant 0 : index
        %62 = vector.load %arg19[%c0_42, %c0_43] : memref<1x32xf32, #tpu.memory_space<vmem>>, vector<1x32xf32>
        %cst_44 = arith.constant dense<0.000000e+00> : vector<16xf32>
        %63 = vector.multi_reduction <add>, %56, %cst_44 [1] : vector<16x32xf32> to vector<16xf32>
        %64 = vector.shape_cast %63 : vector<16xf32> to vector<16x1xf32>
        %cst_45 = arith.constant 3.200000e+01 : f32
        %65 = vector.broadcast %cst_45 : f32 to vector<16x1xf32>
        %66 = arith.divf %64, %65 : vector<16x1xf32>
        %67 = vector.broadcast %66 : vector<16x1xf32> to vector<16x32xf32>
        %68 = arith.subf %56, %67 : vector<16x32xf32>
        %69 = arith.mulf %68, %68 : vector<16x32xf32>
        %cst_46 = arith.constant dense<0.000000e+00> : vector<16xf32>
        %70 = vector.multi_reduction <add>, %69, %cst_46 [1] : vector<16x32xf32> to vector<16xf32>
        %71 = vector.shape_cast %70 : vector<16xf32> to vector<16x1xf32>
        %cst_47 = arith.constant 3.200000e+01 : f32
        %72 = vector.broadcast %cst_47 : f32 to vector<16x1xf32>
        %73 = arith.divf %71, %72 : vector<16x1xf32>
        %74 = vector.broadcast %66 : vector<16x1xf32> to vector<16x32xf32>
        %75 = arith.subf %56, %74 : vector<16x32xf32>
        %cst_48 = arith.constant 9.99999974E-6 : f32
        %76 = vector.broadcast %cst_48 : f32 to vector<16x1xf32>
        %77 = arith.addf %73, %76 : vector<16x1xf32>
        %78 = math.rsqrt %77 : vector<16x1xf32>
        %79 = vector.broadcast %78 : vector<16x1xf32> to vector<16x32xf32>
        %80 = arith.mulf %75, %79 : vector<16x32xf32>
        %81 = vector.broadcast %61 : vector<1x32xf32> to vector<16x32xf32>
        %82 = arith.mulf %80, %81 : vector<16x32xf32>
        %83 = vector.broadcast %62 : vector<1x32xf32> to vector<16x32xf32>
        %84 = arith.addf %82, %83 : vector<16x32xf32>
        %85 = vector.shape_cast %84 : vector<16x32xf32> to vector<2x8x32xf32>
        %c0_49 = arith.constant 0 : index
        %c0_50 = arith.constant 0 : index
        %86 = vector.load %arg5[%c0_49, %c0_50] : memref<2x8xf32, #tpu.memory_space<vmem>>, vector<2x8xf32>
        %87 = vector.shape_cast %86 : vector<2x8xf32> to vector<2x8x1xf32>
        %88 = vector.broadcast %87 : vector<2x8x1xf32> to vector<2x8x32xf32>
        %89 = arith.mulf %85, %88 : vector<2x8x32xf32>
        %cst_51 = arith.constant dense<0.000000e+00> : vector<2x32xf32>
        %90 = vector.multi_reduction <add>, %89, %cst_51 [1] : vector<2x8x32xf32> to vector<2x32xf32>
        %cst_52 = arith.constant dense<0.000000e+00> : vector<2xf32>
        %91 = vector.multi_reduction <add>, %86, %cst_52 [1] : vector<2x8xf32> to vector<2xf32>
        %92 = vector.shape_cast %91 : vector<2xf32> to vector<2x1xf32>
        %cst_53 = arith.constant 1.000000e+00 : f32
        %93 = vector.broadcast %cst_53 : f32 to vector<2x1xf32>
        %94 = arith.maximumf %92, %93 : vector<2x1xf32>
        %95 = vector.broadcast %94 : vector<2x1xf32> to vector<2x32xf32>
        %96 = arith.divf %90, %95 : vector<2x32xf32>
        %c0_54 = arith.constant 0 : index
        %c0_55 = arith.constant 0 : index
        %97 = vector.load %arg20[%c0_54, %c0_55] : memref<2x32xf32, #tpu.memory_space<vmem>>, vector<2x32xf32>
        tpu.vector_store %arg20[%c0_54, %c0_55], %96 {strides = array<i32>} : memref<2x32xf32, #tpu.memory_space<vmem>>, vector<2x32xf32>,
      } else {
      }
    } else {
    }
    return
  }
  func.func @transform_0(%arg0: i32, %arg1: i32, %arg2: i32) -> (i32, i32, i32) {
    %c0_i32 = arith.constant 0 : i32
    %c0_i32_0 = arith.constant 0 : i32
    %c0_i32_1 = arith.constant 0 : i32
    return %arg0, %c0_i32, %c0_i32_0 : i32, i32, i32
  }
  func.func @transform_1(%arg0: i32, %arg1: i32, %arg2: i32) -> (i32, i32) {
    %c0_i32 = arith.constant 0 : i32
    %c0_i32_0 = arith.constant 0 : i32
    return %arg0, %c0_i32 : i32, i32
  }
  func.func @transform_2(%arg0: i32, %arg1: i32, %arg2: i32) -> (i32, i32) {
    %c0_i32 = arith.constant 0 : i32
    %c0_i32_0 = arith.constant 0 : i32
    return %arg0, %c0_i32 : i32, i32
  }
  func.func @transform_3(%arg0: i32, %arg1: i32, %arg2: i32) -> (i32, i32, i32) {
    %c0_i32 = arith.constant 0 : i32
    %c0_i32_0 = arith.constant 0 : i32
    %c0_i32_1 = arith.constant 0 : i32
    return %arg1, %c0_i32, %c0_i32_0 : i32, i32, i32
  }
  func.func @transform_4(%arg0: i32, %arg1: i32, %arg2: i32) -> (i32, i32, i32) {
    %c0_i32 = arith.constant 0 : i32
    %c0_i32_0 = arith.constant 0 : i32
    %c0_i32_1 = arith.constant 0 : i32
    return %arg1, %c0_i32, %c0_i32_0 : i32, i32, i32
  }
  func.func @transform_5(%arg0: i32, %arg1: i32, %arg2: i32) -> (i32, i32, i32) {
    %c0_i32 = arith.constant 0 : i32
    %c0_i32_0 = arith.constant 0 : i32
    %c0_i32_1 = arith.constant 0 : i32
    return %arg1, %c0_i32, %c0_i32_0 : i32, i32, i32
  }
  func.func @transform_6(%arg0: i32, %arg1: i32, %arg2: i32) -> (i32, i32, i32) {
    %c0_i32 = arith.constant 0 : i32
    %c0_i32_0 = arith.constant 0 : i32
    %c0_i32_1 = arith.constant 0 : i32
    return %arg1, %c0_i32, %c0_i32_0 : i32, i32, i32
  }
  func.func @transform_7(%arg0: i32, %arg1: i32, %arg2: i32) -> (i32, i32, i32) {
    %c0_i32 = arith.constant 0 : i32
    %c0_i32_0 = arith.constant 0 : i32
    %c0_i32_1 = arith.constant 0 : i32
    return %arg1, %c0_i32, %c0_i32_0 : i32, i32, i32
  }
  func.func @transform_8(%arg0: i32, %arg1: i32, %arg2: i32) -> (i32, i32, i32) {
    %c0_i32 = arith.constant 0 : i32
    %c0_i32_0 = arith.constant 0 : i32
    %c0_i32_1 = arith.constant 0 : i32
    return %arg1, %c0_i32, %c0_i32_0 : i32, i32, i32
  }
  func.func @transform_9(%arg0: i32, %arg1: i32, %arg2: i32) -> (i32, i32, i32) {
    %c0_i32 = arith.constant 0 : i32
    %c0_i32_0 = arith.constant 0 : i32
    return %arg1, %c0_i32, %arg2 : i32, i32, i32
  }
  func.func @transform_10(%arg0: i32, %arg1: i32, %arg2: i32) -> (i32, i32, i32) {
    %c0_i32 = arith.constant 0 : i32
    %c0_i32_0 = arith.constant 0 : i32
    return %arg1, %c0_i32, %arg2 : i32, i32, i32
  }
  func.func @transform_11(%arg0: i32, %arg1: i32, %arg2: i32) -> (i32, i32, i32) {
    %c0_i32 = arith.constant 0 : i32
    %c0_i32_0 = arith.constant 0 : i32
    return %arg1, %arg2, %c0_i32 : i32, i32, i32
  }
  func.func @transform_12(%arg0: i32, %arg1: i32, %arg2: i32) -> (i32, i32, i32) {
    %c0_i32 = arith.constant 0 : i32
    %c0_i32_0 = arith.constant 0 : i32
    %c0_i32_1 = arith.constant 0 : i32
    return %arg1, %c0_i32, %c0_i32_0 : i32, i32, i32
  }
  func.func @transform_13(%arg0: i32, %arg1: i32, %arg2: i32) -> (i32, i32, i32) {
    %c0_i32 = arith.constant 0 : i32
    %c0_i32_0 = arith.constant 0 : i32
    %c0_i32_1 = arith.constant 0 : i32
    return %arg1, %c0_i32, %c0_i32_0 : i32, i32, i32
  }
  func.func @transform_14(%arg0: i32, %arg1: i32, %arg2: i32) -> (i32, i32, i32) {
    %c0_i32 = arith.constant 0 : i32
    %c0_i32_0 = arith.constant 0 : i32
    %c0_i32_1 = arith.constant 0 : i32
    return %arg1, %c0_i32, %c0_i32_0 : i32, i32, i32
  }
  func.func @transform_15(%arg0: i32, %arg1: i32, %arg2: i32) -> (i32, i32) {
    %c0_i32 = arith.constant 0 : i32
    %c0_i32_0 = arith.constant 0 : i32
    %c0_i32_1 = arith.constant 0 : i32
    return %c0_i32, %c0_i32_0 : i32, i32
  }
  func.func @transform_16(%arg0: i32, %arg1: i32, %arg2: i32) -> (i32, i32) {
    %c0_i32 = arith.constant 0 : i32
    %c0_i32_0 = arith.constant 0 : i32
    %c0_i32_1 = arith.constant 0 : i32
    return %c0_i32, %c0_i32_0 : i32, i32
  }
  func.func @transform_17(%arg0: i32, %arg1: i32, %arg2: i32) -> (i32, i32) {
    %c0_i32 = arith.constant 0 : i32
    %c0_i32_0 = arith.constant 0 : i32
    return %arg0, %c0_i32 : i32, i32
  }
}

</mosaic_0001>

<bundles_post_ra>
// kernel: transformer_encoder_forward.1
= control target key start
LH: loop header
LB: loop body
LE: loop exit
PB: predicated region body
PF: predicated region fallthrough
CT: control target
= control target key end

     0   :  { %s3426_s0 = inlined_call_operand.vmem [shape: f32[2,8,32], index: 0, kind: input, shape index: {}]   ;;  %s3427_s1 = inlined_call_operand.vmem [shape: f32[2,8], index: 1, kind: input, shape index: {}]   ;;  %s3428_s2 = inlined_call_operand.vmem [shape: f32[2,8], index: 2, kind: input, shape index: {}]   ;;  %s3429_s3 = inlined_call_operand.vmem [shape: bf16[2,32,96], index: 3, kind: input, shape index: {}]   ;;  %s3430_s4 = inlined_call_operand.vmem [shape: f32[2,1,96], index: 4, kind: input, shape index: {}]   ;;  %s3431_s5 = inlined_call_operand.vmem [shape: bf16[2,32,32], index: 5, kind: input, shape index: {}]   ;;  %s3432_s6 = inlined_call_operand.vmem [shape: f32[2,1,32], index: 6, kind: input, shape index: {}]   ;;  %s3433_s7 = inlined_call_operand.vmem [shape: f32[2,1,32], index: 7, kind: input, shape index: {}]   ;;  %s3434_s8 = inlined_call_operand.vmem [shape: f32[2,1,32], index: 8, kind: input, shape index: {}]   ;;  %s3435_s9 = inlined_call_operand.vmem [shape: bf16[2,32,64], index: 9, kind: input, shape index: {}]   ;;  %s3436_s10 = inlined_call_operand.vmem [shape: f32[2,1,64], index: 10, kind: input, shape index: {}]   ;;  %s3437_s11 = inlined_call_operand.vmem [shape: bf16[2,64,32], index: 11, kind: input, shape index: {}]   ;;  %s3438_s12 = inlined_call_operand.vmem [shape: f32[2,1,32], index: 12, kind: input, shape index: {}]   ;;  %s3439_s13 = inlined_call_operand.vmem [shape: f32[2,1,32], index: 13, kind: input, shape index: {}]   ;;  %s3440_s14 = inlined_call_operand.vmem [shape: f32[2,1,32], index: 14, kind: input, shape index: {}]   ;;  %s3441_s15 = inlined_call_operand.vmem [shape: f32[1,32], index: 15, kind: input, shape index: {}]   ;;  %s3442_s16 = inlined_call_operand.vmem [shape: f32[1,32], index: 16, kind: input, shape index: {}]   ;;  %s3443_s17 = inlined_call_operand.hbm [shape: f32[2,32], index: 17, kind: output, shape index: {}]  }
   0x1   :  { %3447 = sst [smem:[#allocation12_spill]] %s3426_s0 }
   0x2   :  { %3448 = sst [smem:[#allocation13_spill]] %s3427_s1 }
   0x3   :  { %3449 = sst [smem:[#allocation14_spill]] %s3428_s2 }
   0x4   :  { %3450 = sst [smem:[#allocation15_spill]] %s3429_s3 }
   0x5   :  { %3451 = sst [smem:[#allocation16_spill]] %s3431_s5 }
   0x6   :  { %3452 = sst [smem:[#allocation17_spill]] %s3441_s15 }
   0x7   :  { %3453 = sst [smem:[#allocation18_spill]] %s3442_s16 }
   0x8   :  { %3454 = sst [smem:[#allocation19_spill]] %s3443_s17 }
   0x9   :  { %22 = vsyncpa [#allocation7], 0  ;;  %s3044_s24 = smov 0   ;;  %s3046_s25 = smov 0  }
   0xa   :  { %s3048_s26 = smov 0  }
   0xb LB: > { %3455 = sst [smem:[#allocation9_spill]] %s2930_s25  ;;  %s43_s28 = sadd.s32 1, %s2930_s25  ;;  %s2934_s26 = sphi %s3048_s26, %s28_s26   ;;  %s2930_s25 = sphi %s3046_s25, %s3477_s25   ;;  %s2926_s24 = sphi %s3044_s24, %s3476_s24  }
   0xc   : > { %3456 = sst [smem:[#allocation10_spill]] %s2934_s26  ;;  %p45_p0 = scmp.ge.s32.totalorder %s43_s28, 2 }
   0xd   : > { %p2540_p1 = scmp.ge.s32.totalorder %s2934_s26, 1  ;;  %p647_p2 = scmp.lt.s32.totalorder %s2934_s26, 3 }
   0xe   : > { %s3479_s28 = smov (%p45_p0, %s43_s28), 0 }
   0xf   : > { %3457 = sst [smem:[#allocation11_spill]] %s3479_s28  ;;  %p648_p3 = pnand %p2540_p1, %p647_p2 }
  0x10   : > { %p770_p4 = scmp.lt.s32.totalorder (!%p648_p3), %s2926_s24, 1  ;;  %s3458_s3 = sld [smem:[#allocation15_spill]] (!%p648_p3) }
  0x11   : > { %651 = sbr.rel (%p648_p3) target bundleno = 4344 (0x10f8), region = 88  ;;  %s3459_s5 = sld [smem:[#allocation16_spill]] (!%p648_p3) }
  0x12   : > { %p2549_p5 = scmp.ne.s32.totalorder (!%p648_p3), %s2926_s24, 0 }
  0x16   : > { %s3067_s29 = scalar_select %p770_p4, %s2926_s24, 1 }
  0x17   : > { %s3460_s25 = sld [smem:[#allocation12_spill]] (!%p2549_p5) }
  0x18   : > { %s2596_s0 = sshll.u32 %s3067_s29, 4  ;;  %s818_s2 = scalar_lea.vmem %s3438_s12, %s3067_s29 }
  0x19   : > { %s774_s21 = scalar_lea.vmem %s3458_s3, %s2596_s0  ;;  %s3080_s27 = scalar_lea.vmem %s3459_s5, %s2596_s0 }
  0x1a   : > { %s3097_s20 = scalar_lea.vmem %s3435_s9, %s2596_s0  ;;  %s2599_s5 = sshll.u32 %s3067_s29, 5 }
  0x1b   : > { %s3107_s17 = scalar_lea.vmem %s3437_s11, %s2599_s5  ;;  %s821_s19 = scalar_lea.vmem %s3439_s13, %s3067_s29 }
  0x1c   : > { %s824_s15 = scalar_lea.vmem %s3440_s14, %s3067_s29  ;;  %833 = sbr.rel (%p2549_p5) target bundleno = 35 (0x23), region = 96 }
  0x1d   : > { %s3461_s28 = smov (!%p2549_p5), %s3460_s25 }
  0x21   : > { %v834_v0 = vld [vmem:[%s3460_s25] sm:$0xff]  ;;  %vm836_vm0 = vcmask 261120   ;;  %v835_v1 = vld [vmem:[%s3461_s28 + $0x8] sm:$0xff] }
  0x22   : > { %837 = vst.msk [vmem:[#allocation2] sm:$0xff] %vm836_vm0, %v834_v0  ;;  %838 = vst.msk [vmem:[#allocation2 + $0x8] sm:$0xff] %vm836_vm0, %v835_v1 }
  0x23 PF: > { %v2826_v2 = vld [vmem:[%s774_s21 + $0x8] sm:$0xff]   ;;  %v2936_v3 = vmov 0.0   ;;  %v2827_v4 = vld [vmem:[%s774_s21] sm:$0xff]   ;;  %vm2937_vm1 = vmmov 0   ;;  %vm866_vm2 = vcmask 261120   ;;  %s3462_s18 = scalar_lea.vmem %s3430_s4, %s3067_s29  ;;  %s2938_s16 = smov 96   ;;  %v925_v23 = vlaneseq }
  0x24   : > { %2646 = vmatprep.subr.bf16.mxu0 %v2936_v3  ;;  %2654 = vmatprep.subr.bf16.mxu1 %v2936_v3  ;;  %1980 = vst.msk [vmem:[#allocation5] sm:$0xff] %vm866_vm2, %v2936_v3  ;;  %1981 = vst.msk [vmem:[#allocation5 + $0x8] sm:$0xff] %vm866_vm2, %v2936_v3  ;;  %v2550_v8 = vld [vmem:[%s3462_s18] ss:$0 sm:$0xff]  ;;  %vm949_vm3 = vcmask 64512   ;;  %s3463_s0 = sld [smem:[#allocation13_spill]] }
  0x25   : > { %2647 = vmatpush3.bf16.msra.mxu0 %v2826_v2  ;;  %2650 = vmatprep.mubr.msk.bf16.mxu0 %vm2937_vm1, %v2936_v3  ;;  %v2939_v21 = vmov 1966171168   ;;  %v3172_v25 = vshrl.u32 %v925_v23, 7  ;;  %s2940_s1 = smov 64   ;;  %s2941_s22 = smov 88   ;;  %vm1074_vm4 = vcmask 1043456  }
  0x26   : > { %2648 = vmatprep.subr.bf16.mxu0 %v2936_v3  ;;  %2656 = vmatprep.mubr.msk.bf16.mxu1 %vm2937_vm1, %v2936_v3  ;;  %v923_v22 = vunpack.c.l.s4 %v2939_v21  ;;  %s2942_s23 = smov 120   ;;  %s2943_s25 = smov 56   ;;  %vm1396_vm5 = vcmask 130112   ;;  %vm1627_vm6 = vcmask 195712   ;;  %vm1858_vm7 = vcmask 261312  }
  0x27   : > { %v3179_v29 = vsub.s32 0, %v3172_v25  ;;  %s2944_s5 = smov 80   ;;  %s2945_s3 = smov 112   ;;  %vm2090_vm8 = vcmask 523264  }
  0x28   : > { %v924_v24 = vunpack.c.0.s8 %v923_v22  ;;  %s2946_s21 = smov 48   ;;  %s2947_s18 = smov 72  }
  0x29   : > { %v3132_v5 = vld [vmem:[#allocation2] sm:$0xff]  ;;  %v3134_v6 = vld [vmem:[#allocation2 + $0x8] sm:$0xff]  ;;  %2649 = vmatpush3.bf16.msra.mxu0 %v2827_v4  ;;  %s2949_s26 = smov 40   ;;  %s2950_s30 = smov 8  }
  0x2a   : > { %v842_v7 = vpack.c.bf16 %v3134_v6, %v3132_v5  ;;  %2660 = vmatprep.subr.bf16.mxu0 %v2936_v3  ;;  %v927_v26 = vsub.s32 %v924_v24, %v3172_v25  ;;  %v2554_v27 = vld.sshfl [vmem:[%s3463_s0] sm:$0x11 pattern:$0x75316420]  ;;  %s2951_s0 = smov 16   ;;  %p2589_p6 = scmp.ne.s32.totalorder %s2926_s24, 1 }
  0x2b   : > { %v921_v30 = vcombine.high %v2554_v27, %v2554_v27 }
  0x2c   : > { %2651 = vmatmul.mubr.msk.bf16.vlgmr.msra.gmra.mxu0 %vm866_vm2, %v842_v7  ;;  %v928_v28 = vrot.slane %v2554_v27, %v927_v26 }
  0x2d   : > { %2662 = vmatprep.mubr.msk.bf16.mxu0 %vm2937_vm1, %v2936_v3  ;;  %v935_v32 = vrot.slane %v921_v30, %v927_v26 }
  0x2e   : > { %v3182_v31 = vrot.slane %v928_v28, %v3179_v29 }
  0x2f   : > { %v3186_v35 = vrot.slane %v935_v32, %v3179_v29 }
  0xec   : > { %v904_v9 = vpop.f32.mrf.mxu0 }
  0xed   : > { %v905_v10 = vadd.f32 %v2550_v8, %v904_v9 }
  0xee   : > { %v2652_v11 = vpop.f32.mrf.mxu0 }
  0xef   : > { %v3154_v12 = vpack.c.bf16 %v905_v10, %v905_v10 }
  0xf0   : > { %v907_v13 = vpop.f32.mrf.mxu0 }
  0xf1   : > { %v908_v14 = vadd.f32 %v2550_v8, %v907_v13  ;;  %947 = vrot.lane.b32.xlu0 %v3154_v12, %s2938_s16 }
  0xf2   : > { %v2653_v15 = vpop.f32.mrf.mxu0 }
  0xf3   : > { %v3157_v16 = vpack.c.bf16 %v908_v14, %v908_v14 }
  0xf5   : > { %997 = vrot.lane.b32.xlu0 %v3157_v16, %s2938_s16  ;;  %s2948_s16 = smov 104  }
 0x163   : > { %v948_v17 = vpop.permute.xlu0 %947 }
 0x164   : > { %v954_v18 = vsel %vm949_vm3, %v948_v17, 0 }
 0x165   : > { %2655 = vmatpush3.bf16.xpose.msra.mxu1 %v954_v18 }
 0x166   : > { %2666 = vmatprep.subr.bf16.mxu1 %v2936_v3 }
 0x167   : > { %v998_v19 = vpop.permute.xlu0 %997 }
 0x168   : > { %v1003_v20 = vsel %vm949_vm3, %v998_v19, 0 }
 0x169   : > { %2661 = vmatpush3.bf16.xpose.msra.mxu0 %v1003_v20 }
 0x16a   : > { %2672 = vmatprep.subr.bf16.mxu0 %v2936_v3 }
 0x16c   : > { %2657 = vmatmul.mubr.msk.bf16.vlgmr.msra.gmra.mxu1 %vm949_vm3, %v3154_v12 }
 0x16d   : > { %2668 = vmatprep.mubr.msk.bf16.mxu1 %vm2937_vm1, %v2936_v3 }
 0x170   : > { %2663 = vmatmul.mubr.msk.bf16.vlgmr.msra.gmra.mxu0 %vm949_vm3, %v3157_v16 }
 0x171   : > { %2674 = vmatprep.mubr.msk.bf16.mxu0 %vm2937_vm1, %v2936_v3 }
 0x22c   : > { %v990_v33 = vpop.f32.mrf.mxu1 }
 0x22d   : > { %v991_v34 = vadd.f32 %v990_v33, %v3182_v31 }
 0x22e   : > { %v2658_v36 = vpop.f32.mrf.mxu1 }
 0x22f   : > { %v1045_v37 = vsel %vm949_vm3, %v991_v34, -inf }
 0x230   : > { %1046 = vmax.xlane.f32.xlu1 %v1045_v37  ;;  %v993_v38 = vpop.f32.mrf.mxu1  ;;  %v1039_v39 = vpop.f32.mrf.mxu0 }
 0x231   : > { %v1040_v40 = vadd.f32 %v1039_v39, %v3186_v35 }
 0x232   : > { %v2659_v41 = vpop.f32.mrf.mxu1  ;;  %v2664_v42 = vpop.f32.mrf.mxu0 }
 0x233   : > { %v1048_v43 = vsel %vm949_vm3, %v1040_v40, -inf }
 0x234   : > { %1049 = vmax.xlane.f32.xlu1 %v1048_v43  ;;  %v1042_v44 = vpop.f32.mrf.mxu0 }
 0x236   : > { %v2665_v45 = vpop.f32.mrf.mxu0 }
 0x245   : > { %1069 = vrot.lane.b32.xlu1 %v3154_v12, %s2940_s1 }
 0x249   : > { %1118 = vrot.lane.b32.xlu1 %v3157_v16, %s2940_s1  ;;  %s2952_s1 = smov 24  }
 0x24d   : > { %1170 = vrot.lane.b32.xlu1 %v3154_v12, %s2941_s22 }
 0x2b9   : > { %v1047_v46 = vpop.xlane.xlu1 %1046 }
 0x2ba   : > { %v1051_v47 = vsub.f32 %v991_v34, %v1047_v46 }
 0x2bc   : > { %v1053_v48 = vmul.f32 1.442695, %v1051_v47 }
 0x2bd   : > { %v1050_v49 = vpop.xlane.xlu1 %1049 }
 0x2be   : > { %2836 = vpow2.f32 %v1053_v48  ;;  %v1052_v50 = vsub.f32 %v1040_v40, %v1050_v49 }
 0x2c0   : > { %v1055_v51 = vmul.f32 1.442695, %v1052_v50 }
 0x2c1   : > { %v1070_v52 = vpop.permute.xlu1 %1069 }
 0x2c2   : > { %2838 = vpow2.f32 %v1055_v51  ;;  %v1076_v53 = vsel %vm1074_vm4, %v1070_v52, 0 }
 0x2c3   : > { %2667 = vmatpush3.bf16.msra.mxu1 %v1076_v53 }
 0x2c4   : > { %2678 = vmatprep.subr.bf16.mxu1 %v2936_v3 }
 0x2c5   : > { %v1119_v54 = vpop.permute.xlu1 %1118 }
 0x2c6   : > { %v1124_v55 = vsel %vm1074_vm4, %v1119_v54, 0 }
 0x2c7   : > { %2673 = vmatpush3.bf16.msra.mxu0 %v1124_v55 }
 0x2c8   : > { %2684 = vmatprep.subr.bf16.mxu0 %v2936_v3 }
 0x2c9   : > { %v1171_v60 = vpop.permute.xlu1 %1170 }
 0x2ca   : > { %v1176_v4 = vsel %vm949_vm3, %v1171_v60, 0 }
 0x2cb   : > { %v2837_v56 = vpop.eup %2836 }
 0x2cc   : > { %v1057_v57 = vsel %vm949_vm3, %v2837_v56, 0.0 }
 0x2cd   : > { %1058 = vadd.xlane.f32.xlu0 %v1057_v57 }
 0x2cf   : > { %v2839_v58 = vpop.eup %2838 }
 0x2d0   : > { %v1060_v59 = vsel %vm949_vm3, %v2839_v58, 0.0 }
 0x2d1   : > { %1061 = vadd.xlane.f32.xlu1 %v1060_v59 }
 0x2e2   : > { %1220 = vrot.lane.b32.xlu1 %v3157_v16, %s2941_s22 }
 0x2e3   : > { %1168 = vrot.lane.b32.xlu0 %v3154_v12, %s2942_s23 }
 0x2e6   : > { %1218 = vrot.lane.b32.xlu1 %v3157_v16, %s2942_s23  ;;  %s3464_s23 = scalar_lea.vmem %s3432_s6, %s3067_s29 }
 0x356   : > { %v1059_v61 = vpop.xlane.xlu0 %1058 }
 0x357   : > { %2840 = vrcp.f32 %v1059_v61 }
 0x35a   : > { %v1062_v62 = vpop.xlane.xlu1 %1061  ;;  %v1169_v11 = vpop.permute.xlu0 %1168 }
 0x35b   : > { %2842 = vrcp.f32 %v1062_v62 }
 0x35e   : > { %v1221_v8 = vpop.permute.xlu1 %1220 }
 0x35f   : > { %v1226_v10 = vsel %vm949_vm3, %v1221_v8, 0 }
 0x362   : > { %v1219_v13 = vpop.permute.xlu1 %1218 }
 0x364   : > { %v2841_v63 = vpop.eup %2840 }
 0x365   : > { %v1065_v0 = vmul.f32 %v2841_v63, %v2837_v56 }
 0x367   : > { %v1067_v1 = vpack.c.bf16 %v1065_v0, %v1065_v0 }
 0x368   : > { %v2843_v2 = vpop.eup %2842 }
 0x369   : > { %2669 = vmatmul.mubr.msk.bf16.vlgmr.msra.gmra.mxu1 %vm949_vm3, %v1067_v1  ;;  %v1066_v7 = vmul.f32 %v2843_v2, %v2839_v58 }
 0x36a   : > { %2679 = vmatpush3.bf16.xpose.msra.mxu1 %v1176_v4  ;;  %2680 = vmatprep.mubr.msk.bf16.mxu1 %vm2937_vm1, %v2936_v3 }
 0x36b   : > { %v1068_v9 = vpack.c.bf16 %v1066_v7, %v1066_v7  ;;  %2690 = vmatprep.subr.bf16.mxu1 %v2936_v3 }
 0x36d   : > { %2675 = vmatmul.mubr.msk.bf16.vlgmr.msra.gmra.mxu0 %vm949_vm3, %v1068_v9 }
 0x36e   : > { %2685 = vmatpush3.bf16.xpose.msra.mxu0 %v1226_v10  ;;  %2686 = vmatprep.mubr.msk.bf16.mxu0 %vm2937_vm1, %v2936_v3 }
 0x36f   : > { %2696 = vmatprep.subr.bf16.mxu0 %v2936_v3 }
 0x371   : > { %2681 = vmatmul.mubr.msk.bf16.vlgmr.msra.gmra.mxu1 %vm949_vm3, %v1169_v11 }
 0x372   : > { %2692 = vmatprep.mubr.msk.bf16.mxu1 %vm2937_vm1, %v2936_v3 }
 0x375   : > { %2687 = vmatmul.mubr.msk.bf16.vlgmr.msra.gmra.mxu0 %vm949_vm3, %v1219_v13 }
 0x376   : > { %2698 = vmatprep.mubr.msk.bf16.mxu0 %vm2937_vm1, %v2936_v3 }
 0x429   : > { %v1112_v14 = vpop.f32.mrf.mxu1 }
 0x42a   : > { %1166 = vst.msk [vmem:[#allocation3] sm:$0xff] %vm949_vm3, %v1112_v14 }
 0x42b   : > { %v2670_v15 = vpop.f32.mrf.mxu1 }
 0x42d   : > { %v1115_v17 = vpop.f32.mrf.mxu1  ;;  %v1160_v18 = vpop.f32.mrf.mxu0 }
 0x42e   : > { %1167 = vst.msk [vmem:[#allocation3 + $0x8] sm:$0xff] %vm949_vm3, %v1160_v18 }
 0x42f   : > { %v2671_v19 = vpop.f32.mrf.mxu1  ;;  %v2676_v20 = vpop.f32.mrf.mxu0 }
 0x431   : > { %v1163_v21 = vpop.f32.mrf.mxu0  ;;  %v1212_v22 = vpop.f32.mrf.mxu1 }
 0x432   : > { %v1213_v23 = vadd.f32 %v1212_v22, %v3182_v31 }
 0x433   : > { %v2677_v24 = vpop.f32.mrf.mxu0  ;;  %v2682_v26 = vpop.f32.mrf.mxu1 }
 0x434   : > { %v1268_v27 = vsel %vm949_vm3, %v1213_v23, -inf }
 0x435   : > { %1269 = vmax.xlane.f32.xlu1 %v1268_v27  ;;  %v1215_v28 = vpop.f32.mrf.mxu1  ;;  %v1262_v30 = vpop.f32.mrf.mxu0 }
 0x436   : > { %v1263_v32 = vadd.f32 %v1262_v30, %v3186_v35 }
 0x437   : > { %v2683_v33 = vpop.f32.mrf.mxu1  ;;  %v2688_v34 = vpop.f32.mrf.mxu0 }
 0x438   : > { %v1271_v36 = vsel %vm949_vm3, %v1263_v32, -inf }
 0x439   : > { %1272 = vmax.xlane.f32.xlu0 %v1271_v36  ;;  %v1265_v37 = vpop.f32.mrf.mxu0 }
 0x43b   : > { %v2689_v38 = vpop.f32.mrf.mxu0 }
 0x446   : > { %1292 = vrot.lane.b32.xlu1 %v3154_v12, %s2943_s25 }
 0x44a   : > { %1401 = vrot.lane.b32.xlu1 %v3154_v12, %s2944_s5 }
 0x44f   : > { %1340 = vrot.lane.b32.xlu0 %v3157_v16, %s2943_s25  ;;  %s3469_s25 = sld [smem:[#allocation17_spill]] (!%p2589_p6) }
 0x453   : > { %1399 = vrot.lane.b32.xlu0 %v3154_v12, %s2945_s3 }
 0x4be   : > { %v1270_v39 = vpop.xlane.xlu1 %1269 }
 0x4bf   : > { %v1274_v40 = vsub.f32 %v1213_v23, %v1270_v39 }
 0x4c1   : > { %v1276_v41 = vmul.f32 1.442695, %v1274_v40 }
 0x4c2   : > { %v1293_v42 = vpop.permute.xlu1 %1292  ;;  %v1273_v43 = vpop.xlane.xlu0 %1272 }
 0x4c3   : > { %2844 = vpow2.f32 %v1276_v41  ;;  %v1298_v44 = vsel %vm1074_vm4, %v1293_v42, 0  ;;  %v1275_v45 = vsub.f32 %v1263_v32, %v1273_v43 }
 0x4c4   : > { %2691 = vmatpush3.bf16.msra.mxu1 %v1298_v44 }
 0x4c5   : > { %v1278_v46 = vmul.f32 1.442695, %v1275_v45  ;;  %2702 = vmatprep.subr.bf16.mxu1 %v2936_v3 }
 0x4c6   : > { %v1341_v47 = vpop.permute.xlu0 %1340  ;;  %v1402_v53 = vpop.permute.xlu1 %1401 }
 0x4c7   : > { %2846 = vpow2.f32 %v1278_v46  ;;  %v1346_v48 = vsel %vm1074_vm4, %v1341_v47, 0  ;;  %v1407_v60 = vsel %vm949_vm3, %v1402_v53, 0 }
 0x4c8   : > { %2697 = vmatpush3.bf16.msra.mxu0 %v1346_v48 }
 0x4c9   : > { %2708 = vmatprep.subr.bf16.mxu0 %v2936_v3 }
 0x4ca   : > { %v1400_v1 = vpop.permute.xlu0 %1399 }
 0x4d0   : > { %v2845_v49 = vpop.eup %2844 }
 0x4d1   : > { %v1280_v50 = vsel %vm949_vm3, %v2845_v49, 0.0 }
 0x4d2   : > { %1281 = vadd.xlane.f32.xlu1 %v1280_v50 }
 0x4d4   : > { %v2847_v51 = vpop.eup %2846 }
 0x4d5   : > { %v1283_v52 = vsel %vm949_vm3, %v2847_v51, 0.0 }
 0x4d6   : > { %1284 = vadd.xlane.f32.xlu1 %v1283_v52 }
 0x4e7   : > { %1451 = vrot.lane.b32.xlu1 %v3157_v16, %s2944_s5 }
 0x4eb   : > { %1449 = vrot.lane.b32.xlu1 %v3157_v16, %s2945_s3  ;;  %s3470_s3 = sld [smem:[#allocation18_spill]] (!%p2589_p6) }
 0x55b   : > { %v1282_v54 = vpop.xlane.xlu1 %1281 }
 0x55c   : > { %2848 = vrcp.f32 %v1282_v54 }
 0x55f   : > { %v1285_v55 = vpop.xlane.xlu1 %1284 }
 0x560   : > { %2850 = vrcp.f32 %v1285_v55 }
 0x563   : > { %v1452_v62 = vpop.permute.xlu1 %1451 }
 0x564   : > { %v1457_v0 = vsel %vm949_vm3, %v1452_v62, 0 }
 0x567   : > { %v1450_v2 = vpop.permute.xlu1 %1449 }
 0x569   : > { %v2849_v56 = vpop.eup %2848 }
 0x56a   : > { %v1288_v57 = vmul.f32 %v2849_v56, %v2845_v49 }
 0x56c   : > { %v1290_v58 = vpack.c.bf16 %v1288_v57, %v1288_v57 }
 0x56d   : > { %v2851_v59 = vpop.eup %2850 }
 0x56e   : > { %2693 = vmatmul.mubr.msk.bf16.vlgmr.msra.gmra.mxu1 %vm949_vm3, %v1290_v58  ;;  %v1289_v61 = vmul.f32 %v2851_v59, %v2847_v51 }
 0x56f   : > { %2703 = vmatpush3.bf16.xpose.msra.mxu1 %v1407_v60  ;;  %2704 = vmatprep.mubr.msk.bf16.mxu1 %vm2937_vm1, %v2936_v3 }
 0x570   : > { %v1291_v63 = vpack.c.bf16 %v1289_v61, %v1289_v61  ;;  %2714 = vmatprep.subr.bf16.mxu1 %v2936_v3 }
 0x572   : > { %2699 = vmatmul.mubr.msk.bf16.vlgmr.msra.gmra.mxu0 %vm949_vm3, %v1291_v63 }
 0x573   : > { %2709 = vmatpush3.bf16.xpose.msra.mxu0 %v1457_v0  ;;  %2710 = vmatprep.mubr.msk.bf16.mxu0 %vm2937_vm1, %v2936_v3 }
 0x574   : > { %2720 = vmatprep.subr.bf16.mxu0 %v2936_v3 }
 0x576   : > { %2705 = vmatmul.mubr.msk.bf16.vlgmr.msra.gmra.mxu1 %vm949_vm3, %v1400_v1 }
 0x577   : > { %2716 = vmatprep.mubr.msk.bf16.mxu1 %vm2937_vm1, %v2936_v3 }
 0x57a   : > { %2711 = vmatmul.mubr.msk.bf16.vlgmr.msra.gmra.mxu0 %vm949_vm3, %v1450_v2 }
 0x57b   : > { %2722 = vmatprep.mubr.msk.bf16.mxu0 %vm2937_vm1, %v2936_v3 }
 0x62e   : > { %v3253_v4 = vpop.f32.mrf.mxu1 }
 0x630   : > { %v2694_v7 = vpop.f32.mrf.mxu1 }
 0x632   : > { %v1337_v8 = vpop.f32.mrf.mxu1  ;;  %v3255_v9 = vpop.f32.mrf.mxu0 }
 0x634   : > { %v2695_v10 = vpop.f32.mrf.mxu1  ;;  %v2700_v11 = vpop.f32.mrf.mxu0 }
 0x636   : > { %v1385_v13 = vpop.f32.mrf.mxu0  ;;  %v1443_v14 = vpop.f32.mrf.mxu1 }
 0x637   : > { %v1444_v15 = vadd.f32 %v1443_v14, %v3182_v31 }
 0x638   : > { %v2701_v17 = vpop.f32.mrf.mxu0  ;;  %v2706_v18 = vpop.f32.mrf.mxu1 }
 0x639   : > { %v1499_v19 = vsel %vm949_vm3, %v1444_v15, -inf }
 0x63a   : > { %1500 = vmax.xlane.f32.xlu0 %v1499_v19  ;;  %v1446_v20 = vpop.f32.mrf.mxu1  ;;  %v1493_v21 = vpop.f32.mrf.mxu0 }
 0x63b   : > { %v1494_v22 = vadd.f32 %v1493_v21, %v3186_v35 }
 0x63c   : > { %v2707_v23 = vpop.f32.mrf.mxu1  ;;  %v2712_v24 = vpop.f32.mrf.mxu0 }
 0x63d   : > { %v1502_v26 = vsel %vm949_vm3, %v1494_v22, -inf }
 0x63e   : > { %1503 = vmax.xlane.f32.xlu1 %v1502_v26  ;;  %v1496_v27 = vpop.f32.mrf.mxu0 }
 0x640   : > { %v2713_v28 = vpop.f32.mrf.mxu0 }
 0x64f   : > { %1523 = vrot.lane.b32.xlu1 %v3154_v12, %s2946_s21 }
 0x653   : > { %1632 = vrot.lane.b32.xlu1 %v3154_v12, %s2947_s18 }
 0x657   : > { %1682 = vrot.lane.b32.xlu1 %v3157_v16, %s2947_s18  ;;  %s3466_s18 = scalar_lea.vmem %s3434_s8, %s3067_s29 }
 0x65b   : > { %1680 = vrot.lane.b32.xlu1 %v3157_v16, %s2948_s16 }
 0x6c3   : > { %v1501_v30 = vpop.xlane.xlu0 %1500 }
 0x6c4   : > { %v1505_v32 = vsub.f32 %v1444_v15, %v1501_v30 }
 0x6c6   : > { %v1507_v33 = vmul.f32 1.442695, %v1505_v32 }
 0x6c7   : > { %v1504_v34 = vpop.xlane.xlu1 %1503 }
 0x6c8   : > { %2852 = vpow2.f32 %v1507_v33  ;;  %v1506_v36 = vsub.f32 %v1494_v22, %v1504_v34 }
 0x6ca   : > { %v1509_v37 = vmul.f32 1.442695, %v1506_v36 }
 0x6cb   : > { %v1524_v38 = vpop.permute.xlu1 %1523 }
 0x6cc   : > { %2854 = vpow2.f32 %v1509_v37  ;;  %v1529_v39 = vsel %vm1074_vm4, %v1524_v38, 0 }
 0x6cd   : > { %2715 = vmatpush3.bf16.msra.mxu1 %v1529_v39 }
 0x6ce   : > { %2726 = vmatprep.subr.bf16.mxu1 %v2936_v3 }
 0x6cf   : > { %v1633_v49 = vpop.permute.xlu1 %1632 }
 0x6d0   : > { %v1638_v53 = vsel %vm949_vm3, %v1633_v49, 0 }
 0x6d3   : > { %v1683_v55 = vpop.permute.xlu1 %1682 }
 0x6d4   : > { %v1688_v57 = vsel %vm949_vm3, %v1683_v55, 0 }
 0x6d5   : > { %v2853_v40 = vpop.eup %2852 }
 0x6d6   : > { %v1511_v41 = vsel %vm949_vm3, %v2853_v40, 0.0 }
 0x6d7   : > { %1512 = vadd.xlane.f32.xlu0 %v1511_v41  ;;  %v1681_v59 = vpop.permute.xlu1 %1680 }
 0x6d9   : > { %v2855_v42 = vpop.eup %2854 }
 0x6da   : > { %v1514_v43 = vsel %vm949_vm3, %v2855_v42, 0.0 }
 0x6db   : > { %1515 = vadd.xlane.f32.xlu0 %v1514_v43 }
 0x6f1   : > { %1571 = vrot.lane.b32.xlu0 %v3157_v16, %s2946_s21 }
 0x6f5   : > { %1630 = vrot.lane.b32.xlu0 %v3154_v12, %s2948_s16 }
 0x760   : > { %v1513_v44 = vpop.xlane.xlu0 %1512 }
 0x761   : > { %2856 = vrcp.f32 %v1513_v44 }
 0x764   : > { %v1516_v45 = vpop.xlane.xlu0 %1515 }
 0x765   : > { %2858 = vrcp.f32 %v1516_v45 }
 0x768   : > { %v1572_v46 = vpop.permute.xlu0 %1571 }
 0x769   : > { %v1577_v47 = vsel %vm1074_vm4, %v1572_v46, 0 }
 0x76a   : > { %2721 = vmatpush3.bf16.msra.mxu0 %v1577_v47  ;;  %v2828_v47 = vld [vmem:[%s3080_s27 + $0x8] sm:$0xff]  }
 0x76b   : > { %2732 = vmatprep.subr.bf16.mxu0 %v2936_v3 }
 0x76c   : > { %v1631_v58 = vpop.permute.xlu0 %1630 }
 0x76e   : > { %v2857_v48 = vpop.eup %2856 }
 0x76f   : > { %v1519_v50 = vmul.f32 %v2857_v48, %v2853_v40  ;;  %v2829_v48 = vld [vmem:[%s3080_s27] sm:$0xff]  }
 0x771   : > { %v1521_v51 = vpack.c.bf16 %v1519_v50, %v1519_v50 }
 0x772   : > { %v2859_v52 = vpop.eup %2858 }
 0x773   : > { %2717 = vmatmul.mubr.msk.bf16.vlgmr.msra.gmra.mxu1 %vm949_vm3, %v1521_v51  ;;  %v1520_v54 = vmul.f32 %v2859_v52, %v2855_v42 }
 0x774   : > { %2727 = vmatpush3.bf16.xpose.msra.mxu1 %v1638_v53  ;;  %2728 = vmatprep.mubr.msk.bf16.mxu1 %vm2937_vm1, %v2936_v3 }
 0x775   : > { %v1522_v56 = vpack.c.bf16 %v1520_v54, %v1520_v54  ;;  %2738 = vmatprep.subr.bf16.mxu1 %v2936_v3 }
 0x777   : > { %2723 = vmatmul.mubr.msk.bf16.vlgmr.msra.gmra.mxu0 %vm949_vm3, %v1522_v56 }
 0x778   : > { %2733 = vmatpush3.bf16.xpose.msra.mxu0 %v1688_v57  ;;  %2734 = vmatprep.mubr.msk.bf16.mxu0 %vm2937_vm1, %v2936_v3 }
 0x779   : > { %2744 = vmatprep.subr.bf16.mxu0 %v2936_v3 }
 0x77b   : > { %2729 = vmatmul.mubr.msk.bf16.vlgmr.msra.gmra.mxu1 %vm949_vm3, %v1631_v58 }
 0x77c   : > { %2740 = vmatprep.mubr.msk.bf16.mxu1 %vm2937_vm1, %v2936_v3 }
 0x77f   : > { %2735 = vmatmul.mubr.msk.bf16.vlgmr.msra.gmra.mxu0 %vm949_vm3, %v1681_v59 }
 0x780   : > { %2746 = vmatprep.mubr.msk.bf16.mxu0 %vm2937_vm1, %v2936_v3 }
 0x833   : > { %v1565_v60 = vpop.f32.mrf.mxu1 }
 0x835   : > { %v2718_v61 = vpop.f32.mrf.mxu1 }
 0x837   : > { %v1568_v62 = vpop.f32.mrf.mxu1  ;;  %v1613_v63 = vpop.f32.mrf.mxu0 }
 0x838   : > { %v2571_v62 = vld [vmem:[%s3464_s23] ss:$0 sm:$0xff] }
 0x839   : > { %v2719_v0 = vpop.f32.mrf.mxu1  ;;  %v2724_v1 = vpop.f32.mrf.mxu0 }
 0x83b   : > { %v1616_v2 = vpop.f32.mrf.mxu0  ;;  %v1674_v7 = vpop.f32.mrf.mxu1 }
 0x83c   : > { %v1675_v8 = vadd.f32 %v1674_v7, %v3182_v31 }
 0x83d   : > { %v2725_v10 = vpop.f32.mrf.mxu0  ;;  %v2730_v11 = vpop.f32.mrf.mxu1 }
 0x83e   : > { %v1730_v13 = vsel %vm949_vm3, %v1675_v8, -inf }
 0x83f   : > { %1731 = vmax.xlane.f32.xlu0 %v1730_v13  ;;  %v1677_v14 = vpop.f32.mrf.mxu1  ;;  %v1724_v15 = vpop.f32.mrf.mxu0 }
 0x840   : > { %v1725_v17 = vadd.f32 %v1724_v15, %v3186_v35 }
 0x841   : > { %v2731_v18 = vpop.f32.mrf.mxu1  ;;  %v2736_v19 = vpop.f32.mrf.mxu0 }
 0x842   : > { %v1733_v20 = vsel %vm949_vm3, %v1725_v17, -inf }
 0x843   : > { %1734 = vmax.xlane.f32.xlu1 %v1733_v20  ;;  %v1727_v21 = vpop.f32.mrf.mxu0 }
 0x845   : > { %v2737_v22 = vpop.f32.mrf.mxu0 }
 0x854   : > { %1754 = vrot.lane.b32.xlu1 %v3154_v12, %s2949_s26 }
 0x858   : > { %1390 = vrot.lane.b32.xlu1 %v3253_v4, %s2950_s30 }
 0x85c   : > { %1392 = vrot.lane.b32.xlu1 %v3255_v9, %s2950_s30  ;;  %s3467_s30 = scalar_lea.vmem %s3436_s10, %s3067_s29 }
 0x860   : > { %1623 = vrot.lane.b32.xlu1 %v1613_v63, %s2951_s0 }
 0x8c8   : > { %v1732_v31 = vpop.xlane.xlu0 %1731 }
 0x8c9   : > { %v1736_v35 = vsub.f32 %v1675_v8, %v1732_v31 }
 0x8cb   : > { %v1738_v23 = vmul.f32 1.442695, %v1736_v35 }
 0x8cc   : > { %v1735_v24 = vpop.xlane.xlu1 %1734 }
 0x8cd   : > { %2860 = vpow2.f32 %v1738_v23  ;;  %v1737_v26 = vsub.f32 %v1725_v17, %v1735_v24  ;;  %v2831_v23 = vld [vmem:[%s3097_s20] sm:$0xff]   ;;  %v2832_v24 = vld [vmem:[%s3107_s17 + $0x18] sm:$0xff]  }
 0x8cf   : > { %v1740_v27 = vmul.f32 1.442695, %v1737_v26 }
 0x8d0   : > { %v1755_v28 = vpop.permute.xlu1 %1754 }
 0x8d1   : > { %2862 = vpow2.f32 %v1740_v27  ;;  %v1760_v30 = vsel %vm1074_vm4, %v1755_v28, 0 }
 0x8d2   : > { %2739 = vmatpush3.bf16.msra.mxu1 %v1760_v30 }
 0x8d3   : > { %2750 = vmatprep.subr.bf16.mxu1 %v2936_v3 }
 0x8d4   : > { %v1391_v12 = vpop.permute.xlu1 %1390 }
 0x8d5   : > { %1397 = vst.msk [vmem:[#allocation3] sm:$0xff] %vm1396_vm5, %v1391_v12 }
 0x8d8   : > { %v1393_v4 = vpop.permute.xlu1 %1392 }
 0x8d9   : > { %1398 = vst.msk [vmem:[#allocation3 + $0x8] sm:$0xff] %vm1396_vm5, %v1393_v4 }
 0x8da   : > { %v2861_v9 = vpop.eup %2860 }
 0x8db   : > { %v1742_v32 = vsel %vm949_vm3, %v2861_v9, 0.0 }
 0x8dc   : > { %1743 = vadd.xlane.f32.xlu0 %v1742_v32  ;;  %v1624_v33 = vpop.permute.xlu1 %1623 }
 0x8dd   : > { %1629 = vst.msk [vmem:[#allocation3 + $0x8] sm:$0xff] %vm1627_vm6, %v1624_v33 }
 0x8de   : > { %v2863_v34 = vpop.eup %2862 }
 0x8df   : > { %v1745_v36 = vsel %vm949_vm3, %v2863_v34, 0.0 }
 0x8e0   : > { %1746 = vadd.xlane.f32.xlu0 %v1745_v36 }
 0x8f6   : > { %1802 = vrot.lane.b32.xlu0 %v3157_v16, %s2949_s26 }
 0x8fa   : > { %1621 = vrot.lane.b32.xlu0 %v1565_v60, %s2951_s0 }
 0x965   : > { %v1744_v37 = vpop.xlane.xlu0 %1743 }
 0x966   : > { %2864 = vrcp.f32 %v1744_v37 }
 0x969   : > { %v1747_v38 = vpop.xlane.xlu0 %1746 }
 0x96a   : > { %2866 = vrcp.f32 %v1747_v38 }
 0x96d   : > { %v1803_v39 = vpop.permute.xlu0 %1802 }
 0x96e   : > { %v1808_v40 = vsel %vm1074_vm4, %v1803_v39, 0 }
 0x96f   : > { %2745 = vmatpush3.bf16.msra.mxu0 %v1808_v40 }
 0x970   : > { %2758 = vmatprep.subr.bf16.mxu0 %v2936_v3 }
 0x971   : > { %v1622_v41 = vpop.permute.xlu0 %1621 }
 0x972   : > { %1628 = vst.msk [vmem:[#allocation3] sm:$0xff] %vm1627_vm6, %v1622_v41 }
 0x973   : > { %v2865_v42 = vpop.eup %2864 }
 0x974   : > { %v1750_v43 = vmul.f32 %v2865_v42, %v2861_v9 }
 0x976   : > { %v1752_v44 = vpack.c.bf16 %v1750_v43, %v1750_v43 }
 0x977   : > { %v2867_v16 = vpop.eup %2866 }
 0x978   : > { %2741 = vmatmul.mubr.msk.bf16.vlgmr.msra.gmra.mxu1 %vm949_vm3, %v1752_v44  ;;  %v1751_v45 = vmul.f32 %v2867_v16, %v2863_v34  ;;  %v2576_v34 = vld [vmem:[%s3466_s18] ss:$0 sm:$0xff]  ;;  %v2833_v16 = vld [vmem:[%s3107_s17 + $0x10] sm:$0xff]  }
 0x979   : > { %2754 = vmatprep.mubr.msk.bf16.mxu1 %vm2937_vm1, %v2936_v3  ;;  %2751 = vmatpush3.bf16.msra.mxu1 %v2828_v47  ;;  %v2577_v47 = vld [vmem:[%s3467_s30] ss:$0 sm:$0xff] }
 0x97a   : > { %v1753_v46 = vpack.c.bf16 %v1751_v45, %v1751_v45  ;;  %2752 = vmatprep.subr.bf16.mxu1 %v2936_v3  ;;  %v2834_v45 = vld [vmem:[%s3107_s17 + $0x8] sm:$0xff]  }
 0x97c   : > { %2747 = vmatmul.mubr.msk.bf16.vlgmr.msra.gmra.mxu0 %vm949_vm3, %v1753_v46  ;;  %v2835_v46 = vld [vmem:[%s3107_s17] sm:$0xff]  }
 0x97d   : > { %2762 = vmatprep.mubr.msk.bf16.mxu0 %vm2937_vm1, %v2936_v3  ;;  %2753 = vmatpush3.bf16.msra.mxu1 %v2829_v48 }
 0x97e   : > { %2766 = vmatprep.subr.bf16.mxu1 %v2936_v3 }
 0xa38   : > { %v1796_v49 = vpop.f32.mrf.mxu1 }
 0xa39   : > { %1852 = vrot.lane.b32.xlu0 %v1796_v49, %s2952_s1 }
 0xa3a   : > { %v2742_v50 = vpop.f32.mrf.mxu1 }
 0xa3c   : > { %v1799_v51 = vpop.f32.mrf.mxu1  ;;  %v1844_v52 = vpop.f32.mrf.mxu0 }
 0xa3d   : > { %1854 = vrot.lane.b32.xlu1 %v1844_v52, %s2952_s1 }
 0xa3e   : > { %v2743_v53 = vpop.f32.mrf.mxu1  ;;  %v2748_v54 = vpop.f32.mrf.mxu0 }
 0xa40   : > { %v1847_v55 = vpop.f32.mrf.mxu0 }
 0xa42   : > { %v2749_v56 = vpop.f32.mrf.mxu0 }
 0xaab   : > { %v1853_v57 = vpop.permute.xlu0 %1852 }
 0xaac   : > { %1859 = vst.msk [vmem:[#allocation3] sm:$0xff] %vm1858_vm7, %v1853_v57 }
 0xaaf   : > { %v1855_v58 = vpop.permute.xlu1 %1854 }
 0xab0   : > { %1860 = vst.msk [vmem:[#allocation3 + $0x8] sm:$0xff] %vm1858_vm7, %v1855_v58 }
 0xab3   : > { %v1861_v59 = vld [vmem:[#allocation3] sm:$0xff] }
 0xab7   : > { %v1862_v60 = vld [vmem:[#allocation3 + $0x8] sm:$0xff] }
 0xab8   : > { %v1863_v61 = vpack.c.bf16 %v1862_v60, %v1861_v59  ;;  %v2056_v60 = vld [vmem:[#allocation5 + $0x8] sm:$0xff] }
 0xaba   : > { %2755 = vmatmul.mubr.msk.bf16.vlgmr.msra.gmra.mxu1 %vm866_vm2, %v1863_v61 }
 0xabb   : > { %2774 = vmatprep.mubr.msk.bf16.mxu1 %vm2937_vm1, %v2936_v3  ;;  %2767 = vmatpush3.bf16.msra.mxu1 %v2832_v24 }
 0xabc   : > { %2768 = vmatprep.subr.bf16.mxu1 %v2936_v3 }
 0xabf   : > { %2769 = vmatpush3.bf16.msra.mxu1 %v2833_v16 }
 0xac0   : > { %2770 = vmatprep.subr.bf16.mxu1 %v2936_v3 }
 0xac3   : > { %2771 = vmatpush3.bf16.msra.mxu1 %v2834_v45 }
 0xac4   : > { %2772 = vmatprep.subr.bf16.mxu1 %v2936_v3 }
 0xac7   : > { %2773 = vmatpush3.bf16.msra.mxu1 %v2835_v46 }
 0xb7a   : > { %v1924_v63 = vpop.f32.mrf.mxu1 }
 0xb7b   : > { %v1925_v0 = vadd.f32 %v2571_v62, %v1924_v63 }
 0xb7c   : > { %v2756_v1 = vpop.f32.mrf.mxu1 }
 0xb7d   : > { %v1931_v2 = vadd.f32 %v1925_v0, %v3132_v5  ;;  %v2586_v1 = vld [vmem:[%s818_s2] ss:$0 sm:$0xff] }
 0xb7e   : > { %v1927_v7 = vpop.f32.mrf.mxu1 }
 0xb7f   : > { %v1928_v8 = vadd.f32 %v2571_v62, %v1927_v7  ;;  %v1935_v10 = vsel %vm866_vm2, %v1931_v2, 0.0 }
 0xb80   : > { %1936 = vadd.xlane.f32.xlu0 %v1935_v10  ;;  %v2757_v11 = vpop.f32.mrf.mxu1 }
 0xb81   : > { %v1932_v13 = vadd.f32 %v1928_v8, %v3134_v6  ;;  %v2830_v6 = vld [vmem:[%s3097_s20 + $0x8] sm:$0xff]   ;;  %s3465_s20 = scalar_lea.vmem %s3433_s7, %s3067_s29 }
 0xb82   : > { %2759 = vmatpush3.bf16.msra.mxu0 %v2830_v6  ;;  %v2575_v32 = vld [vmem:[%s3465_s20] ss:$0 sm:$0xff] }
 0xb83   : > { %v1938_v14 = vsel %vm866_vm2, %v1932_v13, 0.0  ;;  %2760 = vmatprep.subr.bf16.mxu0 %v2936_v3  ;;  %v2055_v3 = vld [vmem:[#allocation5] sm:$0xff] }
 0xb84   : > { %1939 = vadd.xlane.f32.xlu1 %v1938_v14 }
 0xb86   : > { %2761 = vmatpush3.bf16.msra.mxu0 %v2831_v23 }
 0xc09   : > { %v1937_v15 = vpop.xlane.xlu0 %1936 }
 0xc0a   : > { %v1942_v17 = vmul.f32 0.03125, %v1937_v15 }
 0xc0c   : > { %v1944_v18 = vsub.f32 %v1931_v2, %v1942_v17 }
 0xc0d   : > { %v1940_v19 = vpop.xlane.xlu1 %1939 }
 0xc0e   : > { %v1943_v20 = vmul.f32 0.03125, %v1940_v19  ;;  %v1946_v5 = vmul.f32 %v1944_v18, %v1944_v18 }
 0xc10   : > { %v1945_v21 = vsub.f32 %v1932_v13, %v1943_v20  ;;  %v1948_v22 = vsel %vm866_vm2, %v1946_v5, 0.0 }
 0xc11   : > { %1949 = vadd.xlane.f32.xlu0 %v1948_v22 }
 0xc12   : > { %v1947_v31 = vmul.f32 %v1945_v21, %v1945_v21 }
 0xc14   : > { %v1951_v35 = vsel %vm866_vm2, %v1947_v31, 0.0 }
 0xc15   : > { %1952 = vadd.xlane.f32.xlu0 %v1951_v35 }
 0xc9a   : > { %v1950_v26 = vpop.xlane.xlu0 %1949 }
 0xc9b   : > { %v1954_v27 = vmul.f32 0.03125, %v1950_v26 }
 0xc9d   : > { %v1956_v28 = vadd.f32 1e-05, %v1954_v27 }
 0xc9e   : > { %v1953_v30 = vpop.xlane.xlu0 %1952 }
 0xc9f   : > { %2868 = vrsqrt.f32 %v1956_v28  ;;  %v1955_v12 = vmul.f32 0.03125, %v1953_v30 }
 0xca1   : > { %v1957_v4 = vadd.f32 1e-05, %v1955_v12  ;;  %v2587_v12 = vld [vmem:[%s821_s19] ss:$0 sm:$0xff]  ;;  %s3468_s19 = sld [smem:[#allocation14_spill]] (!%p2589_p6) }
 0xca3   : > { %2870 = vrsqrt.f32 %v1957_v4 }
 0xcac   : > { %v2869_v9 = vpop.eup %2868 }
 0xcad   : > { %v1960_v33 = vmul.f32 %v2869_v9, %v1944_v18  ;;  %v2588_v9 = vld [vmem:[%s824_s15] ss:$0 sm:$0xff] }
 0xcaf   : > { %v1968_v36 = vmul.f32 %v2575_v32, %v1960_v33 }
 0xcb0   : > { %v2871_v37 = vpop.eup %2870 }
 0xcb1   : > { %v1976_v38 = vadd.f32 %v2576_v34, %v1968_v36  ;;  %v1961_v39 = vmul.f32 %v2871_v37, %v1945_v21 }
 0xcb3   : > { %1978 = vst.msk [vmem:[#allocation4] sm:$0xff] %vm866_vm2, %v1976_v38  ;;  %v1969_v40 = vmul.f32 %v2575_v32, %v1961_v39 }
 0xcb5   : > { %v1977_v41 = vadd.f32 %v2576_v34, %v1969_v40 }
 0xcb7   : > { %1979 = vst.msk [vmem:[#allocation4 + $0x8] sm:$0xff] %vm866_vm2, %v1977_v41 }
 0xcba   : > { %v1982_v42 = vld [vmem:[#allocation4] sm:$0xff] }
 0xcbe   : > { %v1983_v43 = vld [vmem:[#allocation4 + $0x8] sm:$0xff] }
 0xcbf   : > { %v1984_v44 = vpack.c.bf16 %v1983_v43, %v1982_v42 }
 0xcc1   : > { %2763 = vmatmul.mubr.msk.bf16.vlgmr.msra.gmra.mxu0 %vm866_vm2, %v1984_v44 }
 0xd81   : > { %v2046_v48 = vpop.f32.mrf.mxu0 }
 0xd82   : > { %v2047_v50 = vadd.f32 %v2577_v47, %v2046_v48 }
 0xd83   : > { %v2764_v49 = vpop.f32.mrf.mxu0 }
 0xd84   : > { %v2053_v54 = vmax.f32 %v2047_v50, 0.0 }
 0xd85   : > { %v2049_v51 = vpop.f32.mrf.mxu0 }
 0xd86   : > { %v2050_v52 = vadd.f32 %v2577_v47, %v2049_v51 }
 0xd87   : > { %v2765_v53 = vpop.f32.mrf.mxu0 }
 0xd88   : > { %v2054_v55 = vmax.f32 %v2050_v52, 0.0 }
 0xd8a   : > { %v2057_v56 = vpack.c.bf16 %v2054_v55, %v2053_v54 }
 0xd8c   : > { %2775 = vmatmul.mubr.msk.bf16.vlgmr.msra.gmra.mxu1 %vm2090_vm8, %v2057_v56 }
 0xe4c   : > { %v2128_v57 = vpop.f32.mrf.mxu1 }
 0xe4d   : > { %v2135_v58 = vadd.f32 %v2128_v57, %v2055_v3 }
 0xe4e   : > { %v2776_v59 = vpop.f32.mrf.mxu1 }
 0xe4f   : > { %2137 = vst.msk [vmem:[#allocation5] sm:$0xff] %vm866_vm2, %v2135_v58 }
 0xe50   : > { %v2131_v61 = vpop.f32.mrf.mxu1 }
 0xe51   : > { %v2136_v62 = vadd.f32 %v2131_v61, %v2056_v60 }
 0xe52   : > { %v2777_v63 = vpop.f32.mrf.mxu1 }
 0xe53   : > { %2138 = vst.msk [vmem:[#allocation5 + $0x8] sm:$0xff] %vm866_vm2, %v2136_v62 }
 0xe56   : > { %v2144_v0 = vld [vmem:[#allocation5] sm:$0xff] }
 0xe57   : > { %v2146_v2 = vadd.f32 %v2144_v0, %v1982_v42 }
 0xe59   : > { %v2155_v7 = vadd.f32 %v2586_v1, %v2146_v2 }
 0xe5a   : > { %v2145_v8 = vld [vmem:[#allocation5 + $0x8] sm:$0xff] }
 0xe5b   : > { %v2159_v10 = vsel %vm866_vm2, %v2155_v7, 0.0  ;;  %v2147_v11 = vadd.f32 %v2145_v8, %v1983_v43 }
 0xe5c   : > { %2160 = vadd.xlane.f32.xlu1 %v2159_v10 }
 0xe5d   : > { %v2156_v13 = vadd.f32 %v2586_v1, %v2147_v11 }
 0xe5f   : > { %v2162_v14 = vsel %vm866_vm2, %v2156_v13, 0.0 }
 0xe60   : > { %2163 = vadd.xlane.f32.xlu0 %v2162_v14 }
 0xee5   : > { %v2161_v15 = vpop.xlane.xlu1 %2160 }
 0xee6   : > { %v2166_v17 = vmul.f32 0.03125, %v2161_v15 }
 0xee8   : > { %v2168_v18 = vsub.f32 %v2155_v7, %v2166_v17 }
 0xee9   : > { %v2164_v19 = vpop.xlane.xlu0 %2163 }
 0xeea   : > { %v2167_v20 = vmul.f32 0.03125, %v2164_v19  ;;  %v2170_v5 = vmul.f32 %v2168_v18, %v2168_v18 }
 0xeec   : > { %v2169_v21 = vsub.f32 %v2156_v13, %v2167_v20  ;;  %v2172_v22 = vsel %vm866_vm2, %v2170_v5, 0.0 }
 0xeed   : > { %2173 = vadd.xlane.f32.xlu1 %v2172_v22 }
 0xeee   : > { %v2171_v31 = vmul.f32 %v2169_v21, %v2169_v21 }
 0xef0   : > { %v2175_v35 = vsel %vm866_vm2, %v2171_v31, 0.0 }
 0xef1   : > { %2176 = vadd.xlane.f32.xlu0 %v2175_v35 }
 0xf76   : > { %v2174_v6 = vpop.xlane.xlu1 %2173 }
 0xf77   : > { %v2178_v23 = vmul.f32 0.03125, %v2174_v6 }
 0xf79   : > { %v2180_v24 = vadd.f32 1e-05, %v2178_v23 }
 0xf7a   : > { %v2177_v26 = vpop.xlane.xlu0 %2176 }
 0xf7b   : > { %2872 = vrsqrt.f32 %v2180_v24  ;;  %v2179_v27 = vmul.f32 0.03125, %v2177_v26 }
 0xf7d   : > { %v2181_v28 = vadd.f32 1e-05, %v2179_v27 }
 0xf7f   : > { %2874 = vrsqrt.f32 %v2181_v28 }
 0xf88   : > { %v2873_v30 = vpop.eup %2872 }
 0xf89   : > { %v2184_v4 = vmul.f32 %v2873_v30, %v2168_v18 }
 0xf8b   : > { %v2192_v32 = vmul.f32 %v2587_v12, %v2184_v4 }
 0xf8c   : > { %v2875_v33 = vpop.eup %2874 }
 0xf8d   : > { %v2200_v34 = vadd.f32 %v2588_v9, %v2192_v32  ;;  %v2185_v36 = vmul.f32 %v2875_v33, %v2169_v21 }
 0xf8f   : > { %2202 = vst.msk [vmem:[#allocation2] sm:$0xff] %vm866_vm2, %v2200_v34  ;;  %v2193_v37 = vmul.f32 %v2587_v12, %v2185_v36  ;;  %2207 = sbr.rel (%p2589_p6) target bundleno = 4319 (0x10df), region = 104 }
 0xf91   : > { %v2201_v38 = vadd.f32 %v2588_v9, %v2193_v37 }
 0xf93   : > { %2203 = vst.msk [vmem:[#allocation2 + $0x8] sm:$0xff] %vm866_vm2, %v2201_v38 }
 0xf94   : > { %v2213_v39 = vsel %vm866_vm2, %v2201_v38, 0.0  ;;  %v2210_v40 = vsel %vm866_vm2, %v2200_v34, 0.0  ;;  %v2252_v41 = vld [vmem:[%s3468_s19] sm:$0x3]  ;;  %vm2283_vm9 = vcmask 58368   ;;  %v2262_v53 = vsub.s32 1, %v3172_v25 }
 0xf95   : > { %2214 = vadd.xlane.f32.xlu0 %v2213_v39  ;;  %v2284_v42 = vsel %vm2283_vm9, %v2252_v41, 0.0  ;;  %v2256_v43 = vrot.slane %v2252_v41, %v3179_v29  ;;  %v2590_v62 = vld [vmem:[%s3469_s25] ss:$0 sm:$0xff]  ;;  %vm2299_vm10 = vcmask 1041409   ;;  %vm2302_vm11 = vcmask 254976  }
 0xf96   : > { %v2263_v54 = vrot.slane %v2252_v41, %v2262_v53  ;;  %v2591_v25 = vld [vmem:[%s3470_s3] ss:$0 sm:$0xff] }
 0xf99   : > { %2211 = vadd.xlane.f32.xlu0 %v2210_v40 }
 0xf9d   : > { %2285 = vadd.xlane.f32.xlu0 %v2284_v42 }
 0xfb3   : > { %2258 = vbcast.lane.b32.xlu0 %v2256_v43, 256 }
0x101e   : > { %v2215_v44 = vpop.xlane.xlu0 %2214 }
0x101f   : > { %v2217_v16 = vmul.f32 0.03125, %v2215_v44 }
0x1021   : > { %v2219_v45 = vsub.f32 %v2201_v38, %v2217_v16 }
0x1022   : > { %v2212_v46 = vpop.xlane.xlu0 %2211 }
0x1023   : > { %v2216_v47 = vmul.f32 0.03125, %v2212_v46  ;;  %v2221_v48 = vmul.f32 %v2219_v45, %v2219_v45 }
0x1025   : > { %v2218_v49 = vsub.f32 %v2200_v34, %v2216_v47  ;;  %v2225_v50 = vsel %vm866_vm2, %v2221_v48, 0.0 }
0x1026   : > { %2226 = vadd.xlane.f32.xlu1 %v2225_v50  ;;  %v2286_v59 = vpop.xlane.xlu0 %2285 }
0x1027   : > { %v2220_v51 = vmul.f32 %v2218_v49, %v2218_v49  ;;  %v2287_v60 = vmax.f32 %v2286_v59, 1.0 }
0x1029   : > { %v2222_v52 = vsel %vm866_vm2, %v2220_v51, 0.0  ;;  %v2289_v0 = vrot.slane %v2287_v60, 1 }
0x102a   : > { %2223 = vadd.xlane.f32.xlu1 %v2222_v52  ;;  %v2259_v14 = vpop.permute.xlu0 %2258 }
0x103b   : > { %2265 = vbcast.lane.b32.xlu1 %v2263_v54, 256 }
0x10af   : > { %v2227_v29 = vpop.xlane.xlu1 %2226 }
0x10b0   : > { %v2229_v55 = vmul.f32 0.03125, %v2227_v29 }
0x10b2   : > { %v2231_v56 = vadd.f32 1e-05, %v2229_v55 }
0x10b3   : > { %v2224_v3 = vpop.xlane.xlu1 %2223 }
0x10b4   : > { %2876 = vrsqrt.f32 %v2231_v56  ;;  %v2228_v57 = vmul.f32 0.03125, %v2224_v3 }
0x10b6   : > { %v2230_v58 = vadd.f32 1e-05, %v2228_v57 }
0x10b7   : > { %v2266_v7 = vpop.permute.xlu1 %2265 }
0x10b8   : > { %2878 = vrsqrt.f32 %v2230_v58 }
0x10b9   : > { %2880 = vrcp.f32 %v2289_v0 }
0x10ba   : > { %2882 = vrcp.f32 %v2287_v60 }
0x10c1   : > { %v2877_v61 = vpop.eup %2876 }
0x10c2   : > { %v2235_v63 = vmul.f32 %v2877_v61, %v2219_v45 }
0x10c4   : > { %v2243_v1 = vmul.f32 %v2590_v62, %v2235_v63 }
0x10c5   : > { %v2879_v2 = vpop.eup %2878 }
0x10c6   : > { %v2251_v8 = vadd.f32 %v2591_v25, %v2243_v1  ;;  %v2234_v10 = vmul.f32 %v2879_v2, %v2218_v49  ;;  %v2881_v24 = vpop.eup %2880 }
0x10c7   : > { %v2883_v4 = vpop.eup %2882 }
0x10c8   : > { %v2268_v11 = vmul.f32 %v2266_v7, %v2251_v8  ;;  %v2242_v13 = vmul.f32 %v2590_v62, %v2234_v10 }
0x10ca   : > { %v2276_v15 = vsel %vm866_vm2, %v2268_v11, 0.0  ;;  %v2250_v17 = vadd.f32 %v2591_v25, %v2242_v13 }
0x10cb   : > { %v2277_v18 = vrot.slane %v2276_v15, 4 }
0x10cc   : > { %v2267_v19 = vmul.f32 %v2259_v14, %v2250_v17 }
0x10cd   : > { %v2278_v20 = vadd.f32 %v2277_v18, %v2276_v15 }
0x10ce   : > { %v2269_v5 = vsel %vm866_vm2, %v2267_v19, 0.0 }
0x10cf   : > { %v2279_v21 = vrot.slane %v2278_v20, 2  ;;  %v2270_v22 = vrot.slane %v2269_v5, 4 }
0x10d1   : > { %v2280_v31 = vadd.f32 %v2279_v21, %v2278_v20  ;;  %v2271_v35 = vadd.f32 %v2270_v22, %v2269_v5 }
0x10d3   : > { %v2281_v6 = vrot.slane %v2280_v31, 1  ;;  %v2272_v23 = vrot.slane %v2271_v35, 2 }
0x10d5   : > { %v2282_v26 = vadd.f32 %v2281_v6, %v2280_v31  ;;  %v2273_v27 = vadd.f32 %v2272_v23, %v2271_v35 }
0x10d7   : > { %v2295_v28 = vmul.f32 %v2881_v24, %v2282_v26  ;;  %v2274_v30 = vrot.slane %v2273_v27, 1 }
0x10d9   : > { %v2275_v12 = vadd.f32 %v2274_v30, %v2273_v27  ;;  %v2298_v9 = vrot.slane %v2295_v28, 7 }
0x10db   : > { %v2293_v32 = vmul.f32 %v2883_v4, %v2275_v12 }
0x10dd   : > { %v2300_v33 = vsel %vm2299_vm10, %v2298_v9, %v2293_v32 }
0x10de   : > { %2303 = vst.msk [vmem:[#allocation6] sm:$0x3] %vm2302_vm11, %v2300_v33 }
0x10df PF: > { %s3471_s21 = sld [smem:[#allocation10_spill]]  ;;  %s2953_s26 = smov [#allocation6]  }
0x10e0   : > { %s2313_s30 = sshll.u32 %s2953_s26, 4  ;;  %s2314_s30 = int_to_ptr.vmem [resolvable:$true] %s2313_s30 }
0x10e1   : > { %s2884_s17 = scalar_lea.vmem %s2314_s30, 32  ;;  %p2891_p11 = scmp.lt.s32.totalorder %s2314_s30, %s2314_s30 }
0x10e2   : > { %p2885_p8 = scmp.ne.s32.totalorder %s2314_s30, %s2884_s17  ;;  %p2892_p12 = scmp.lt.s32.totalorder %s2884_s17, %s2884_s17 }
0x10e4   : > { %p2893_p13 = por %p2892_p12, %p2891_p11 }
0x10e5   : > { %s3472_s18 = sadd.s32 4294967295, %s3471_s21  }
0x10e6   : > { %p3402_p7 = scmp.eq.s32.totalorder %s3472_s18, 1 }
0x10e8   : > { %p2886_p9 = pnand %p2885_p8, %p3402_p7 }
0x10ea   : > { %p2887_p10 = pneg %p2886_p9 }
0x10ec   : > { %p2894_p0 = pnand %p2893_p13, %p2887_p10 }
0x10ee   : > { %2897 = shalt.err (!%p2894_p0)
}
0x10ef   : > { %s3474_s1 = sld [smem:[#allocation19_spill]] }
0x10f5   : > { %2779 = dma.vmem_to_hbm [thread:$0]  (%p3402_p7), %s2314_s30, 32, %s3474_s1, [#allocation7]  }
0x10f6   : > { %2921 = dma.done.wait (%p3402_p7), [#allocation7], 32  }
0x10f7   : > { %2923 = vsyncadd (%p3402_p7), [#allocation7], 4294967264 }
0x10f8 PF: > { %s3475_s27 = sld [smem:[#allocation10_spill]] }
0x10f9   : > { %s3476_s24 = sld [smem:[#allocation9_spill]] }
0x10fa   : > { %s3477_s25 = sld [smem:[#allocation11_spill]] }
0x10fe   : > { %s28_s26 = sadd.s32 1, %s3475_s27  }
0x10ff   : > { %p25_p1 = scmp.ge.s32.totalorder %s28_s26, 4  }
0x1101   :  { %27 = sbr.rel (!%p25_p1) target bundleno = 11 (0xb), region = 174 }
0x1106   :  { %2326 = vsyncpa [#allocation7], 1 }
0x1107   :  { %2328 = vsyncpa [#allocation7 + $0x1], 1 }

</bundles_post_ra>
